<compile_context>
chip_gen: v5e
topology: v5e:2x2
jax: 0.10.0
libtpu: 0.0.40
codegen_flags: <defaults>
</compile_context>

<pallas_src>
import jax
import jax.numpy as jnp
from jax.experimental import pallas as pl
from jax.experimental.pallas import tpu as pltpu

EPS = 1e-5
LANE = 128   # lane-dense channel padding
SUB = 8      # f32 sublane row padding


# ---------------------------------------------------------------------------
# helpers
# ---------------------------------------------------------------------------
def _round_up(x, m):
    return (x + m - 1) // m * m


def _pad_to(x, shape):
    return jnp.pad(x, [(0, s - d) for d, s in zip(x.shape, shape)])


def _bn_relu(h, gamma, beta, n_true, row_mask):
    """Folded training-mode BatchNorm1d + ReLU, single-pass E[x^2]-mu^2.

    h: (R, C) f32 with rows >= n_true exactly zero on entry (so both sums get zero
    contribution from padding).  Padded rows are re-zeroed on output so downstream
    matmuls / stats stay correct.  Padded (gamma=beta=0) lanes also stay zero.
    """
    inv_n = 1.0 / float(n_true)
    mu = jnp.sum(h, axis=0, keepdims=True) * inv_n
    ex2 = jnp.sum(h * h, axis=0, keepdims=True) * inv_n
    var = jnp.maximum(ex2 - mu * mu, 0.0)
    scale = gamma * jax.lax.rsqrt(var + EPS)
    shift = beta - mu * scale
    out = jnp.maximum(h * scale + shift, 0.0)
    return jnp.where(row_mask, out, 0.0)


# ---------------------------------------------------------------------------
# fused kernel: all conv layers + readout + final_mlp + lin
# ---------------------------------------------------------------------------
def _make_fused_kernel(num_layers, n_nodes, n_edge_rows, n_graphs, hidden):
    def kernel(*refs):
        bf = jnp.bfloat16
        f32 = jnp.float32

        node_ref, edge_ref, gN_ref, pooln_ref, invc_ref = refs[:5]
        o_ref = refs[-1]
        wrefs = refs[5:-1]

        NP = node_ref.shape[0]
        EP = edge_ref.shape[0]
        BP = o_ref.shape[0]

        node_rep = node_ref[...]                      # (NP, LANE) bf16
        edge_rep = edge_ref[...]                      # (EP, LANE) bf16
        gN = gN_ref[...]                              # (EP, NP)   bf16 one-hot
        pooln = pooln_ref[...]                        # (BP, NP)   bf16 one-hot
        invc = invc_ref[...]                          # (BP, 1)    f32 (0 on padded rows)

        erow = jax.lax.broadcasted_iota(jnp.int32, (EP, 1), 0)
        nrow = jax.lax.broadcasted_iota(jnp.int32, (NP, 1), 0)
        grow = jax.lax.broadcasted_iota(jnp.int32, (BP, 1), 0)
        emask = erow < n_edge_rows
        nmask = nrow < n_nodes
        gmask = grow < n_graphs
        is_even = (erow % 2) == 0

        e2n = None
        for l in range(num_layers):
            (ew1, eg1, eb1, ew2, eg2, eb2,
             nw1, ng1, nb1, nw2, ng2, nb2) = wrefs[l * 12:(l + 1) * 12]

            # node -> edge-row gather (0->1): exact one-hot row copy, on the MXU.
            n2e = jnp.dot(gN, node_rep, preferred_element_type=f32)       # (EP, LANE)

            # linmaps pair-sum: bsum[2e] = bsum[2e+1] = n2e[2e] + n2e[2e+1]
            # (two non-negative sublane rolls + parity select; no gS matmul).
            up = pltpu.roll(n2e, shift=EP - 1, axis=0)    # row i -> n2e[i+1]
            dn = pltpu.roll(n2e, shift=1, axis=0)         # row i -> n2e[i-1]
            bsum = n2e + jnp.where(is_even, up, dn)

            # lane-pack [edge | n2e | bsum] into lanes [0:h | h:2h | 2h:3h] -> 1 dot.
            packed_e = (edge_rep.astype(f32)
                        + pltpu.roll(n2e, shift=hidden, axis=1)
                        + pltpu.roll(bsum, shift=2 * hidden, axis=1)).astype(bf)

            # edge MLP: Linear(3h->2h), BN, ReLU, Linear(2h->h), BN, ReLU.
            h = jnp.dot(packed_e, ew1[...], preferred_element_type=f32)
            h = _bn_relu(h, eg1[...], eb1[...], n_edge_rows, emask)
            h = jnp.dot(h.astype(bf), ew2[...], preferred_element_type=f32)
            edge_rep = _bn_relu(h, eg2[...], eb2[...], n_edge_rows, emask).astype(bf)

            # edge-row -> node segment sum (1->0): gN^T @ edge_rep via transposed-LHS
            # contraction (no materialised scatter matrix).
            e2n = jax.lax.dot_general(gN, edge_rep, (((0,), (0,)), ((), ())),
                                      preferred_element_type=f32)         # (NP, LANE)

            # node MLP: lane-pack [node | e2n] into lanes [0:h | h:2h] -> 1 dot.
            packed_n = (node_rep.astype(f32)
                        + pltpu.roll(e2n, shift=hidden, axis=1)).astype(bf)
            g = jnp.dot(packed_n, nw1[...], preferred_element_type=f32)
            g = _bn_relu(g, ng1[...], nb1[...], n_nodes, nmask)
            g = jnp.dot(g.astype(bf), nw2[...], preferred_element_type=f32)
            node_rep = _bn_relu(g, ng2[...], nb2[...], n_nodes, nmask).astype(bf)

        if e2n is None:   # num_layers == 0: readout still gathers edge->node.
            e2n = jax.lax.dot_general(gN, edge_rep, (((0,), (0,)), ((), ())),
                                      preferred_element_type=f32)

        (hw1, hg1, hb1, hw2, hg2, hb2, hw3, hbias) = wrefs[num_layers * 12:]

        # readout: per-graph mean of [node_rep | edge->node gather] (reuses last e2n).
        pooled_n = jnp.dot(pooln, node_rep, preferred_element_type=f32) * invc
        pooled_e = jnp.dot(pooln, e2n.astype(bf), preferred_element_type=f32) * invc
        packed_g = (pooled_n + pltpu.roll(pooled_e, shift=hidden, axis=1)).astype(bf)

        # final_mlp + lin (with bias).
        t = jnp.dot(packed_g, hw1[...], preferred_element_type=f32)
        t = _bn_relu(t, hg1[...], hb1[...], n_graphs, gmask)
        t = jnp.dot(t.astype(bf), hw2[...], preferred_element_type=f32)
        t = _bn_relu(t, hg2[...], hb2[...], n_graphs, gmask)
        o_ref[...] = (jnp.dot(t.astype(bf), hw3[...], preferred_element_type=f32)
                      + hbias[...])

    return kernel


# ---------------------------------------------------------------------------
# Parameter initialization (deterministic, synthetic), then pad for TPU.
# ---------------------------------------------------------------------------
def _linear(key, din, dout):
    return 0.1 * jax.random.normal(key, (din, dout), jnp.float32)


def _bn(dim):
    return jnp.ones((1, dim), jnp.float32), jnp.zeros((1, dim), jnp.float32)


def init_params(key, hidden, dense, out_dim, num_layers,
                num_node_types, num_edge_types):
    mult = 2  # _inner_mlp_mult
    keys = jax.random.split(key, 4 + 4 * num_layers)
    params = {
        "node_emb": 0.1 * jax.random.normal(keys[0], (num_node_types, hidden), jnp.float32),
        "edge_emb": 0.1 * jax.random.normal(keys[1], (num_edge_types, hidden), jnp.float32),
        "conv_layers": [],
    }
    kidx = 2
    for _ in range(num_layers):
        g1, b1 = _bn(hidden * mult)
        g2, b2 = _bn(hidden)
        edge_mlp = (_linear(keys[kidx], 3 * hidden, hidden * mult), g1, b1,
                    _linear(keys[kidx + 1], hidden * mult, hidden), g2, b2)
        g3, b3 = _bn(hidden * mult)
        g4, b4 = _bn(hidden)
        node_mlp = (_linear(keys[kidx + 2], 2 * hidden, hidden * mult), g3, b3,
                    _linear(keys[kidx + 3], hidden * mult, hidden), g4, b4)
        params["conv_layers"].append({"edge_mlp": edge_mlp, "node_mlp": node_mlp})
        kidx += 4
    gh1, bh1 = _bn(dense)
    gh2, bh2 = _bn(dense)
    params["head"] = (_linear(keys[kidx], 2 * hidden, dense), gh1, bh1,
                      _linear(keys[kidx + 1], dense, dense), gh2, bh2,
                      _linear(jax.random.fold_in(key, 99), dense, out_dim),
                      jnp.zeros((1, out_dim), jnp.float32))
    return params


def pad_params(params, hidden, dense, out_dim):
    """Zero-pad channel dims to 128; weights become bf16 MXU operands.

    First-layer weights need NO row split: the kernel lane-packs the concatenated
    activations at offsets 0 / hidden / 2*hidden, which matches the original
    concat order of the (3h x .) / (2h x .) weight rows.
    """
    mult = 2
    CH = _round_up(hidden, LANE)
    CM = _round_up(hidden * mult, LANE)
    CD = _round_up(dense, LANE)
    CO = _round_up(out_dim, LANE)
    # TODO(synk): for 3*hidden > CH fall back to split-K dots instead of lane packing.
    assert 3 * hidden <= CH, "lane-packed first Linear requires 3*hidden <= padded width"
    bf = jnp.bfloat16

    padded = {"node_emb": params["node_emb"], "edge_emb": params["edge_emb"],
              "conv_layers": [], "dims": (CH, CM, CD, CO),
              "hidden": hidden, "out_dim": out_dim}
    for lp in params["conv_layers"]:
        w1, g1, b1, w2, g2, b2 = lp["edge_mlp"]
        v1, ng1, nb1, v2, ng2, nb2 = lp["node_mlp"]
        padded["conv_layers"].append((
            _pad_to(w1, (CH, CM)).astype(bf), _pad_to(g1, (1, CM)), _pad_to(b1, (1, CM)),
            _pad_to(w2, (CM, CH)).astype(bf), _pad_to(g2, (1, CH)), _pad_to(b2, (1, CH)),
            _pad_to(v1, (CH, CM)).astype(bf), _pad_to(ng1, (1, CM)), _pad_to(nb1, (1, CM)),
            _pad_to(v2, (CM, CH)).astype(bf), _pad_to(ng2, (1, CH)), _pad_to(nb2, (1, CH)),
        ))
    hw1, hg1, hb1, hw2, hg2, hb2, hw3, hbias = params["head"]
    padded["head"] = (
        _pad_to(hw1, (CH, CD)).astype(bf), _pad_to(hg1, (1, CD)), _pad_to(hb1, (1, CD)),
        _pad_to(hw2, (CD, CD)).astype(bf), _pad_to(hg2, (1, CD)), _pad_to(hb2, (1, CD)),
        _pad_to(hw3, (CD, CO)).astype(bf), _pad_to(hbias, (1, CO)),
    )
    return padded


# ---------------------------------------------------------------------------
# Model forward: embeddings + one-hot graph matrices in XLA, one fused kernel.
# ---------------------------------------------------------------------------
def model_forward(pparams, x_node, edge_attr, edge_index, batch, num_graphs):
    CH, CM, CD, CO = pparams["dims"]
    hidden = pparams["hidden"]
    out_dim = pparams["out_dim"]
    num_layers = len(pparams["conv_layers"])
    N = x_node.shape[0]
    E = edge_index.shape[1]
    E2 = 2 * E
    NP = _round_up(N, SUB)
    EP = _round_up(E2, SUB)
    BP = _round_up(num_graphs, SUB)

    # flat atom index per edge-ptensor row: [src0, dst0, src1, dst1, ...]
    ei = edge_index.T.reshape(-1)                                       # (2E,)

    # encoders (embedding lookups)
    node_feat = pparams["node_emb"][x_node]                             # (N, h)
    edge_feat = pparams["edge_emb"][edge_attr]                          # (E, h)

    # gather_from_ptensors(edge_rep0, G, edge): broadcast onto both atom rows.
    edge0 = jnp.broadcast_to(edge_feat[:, None, :], (E, 2, hidden)).reshape(E2, hidden)

    node_in = _pad_to(node_feat, (NP, CH)).astype(jnp.bfloat16)
    edge_in = _pad_to(edge0, (EP, CH)).astype(jnp.bfloat16)

    # Single one-hot node->edge-row matrix; its transpose (used via a transposed
    # contraction) is the edge->node segment-sum, so no sc/gS/poole matrices.
    # TODO(synk): store gN/pooln as int8 (v5e/v6e) / fp8 (v7x) for large graphs.
    gN = _pad_to(jax.nn.one_hot(ei, N, dtype=jnp.float32), (EP, NP)).astype(jnp.bfloat16)

    pooln_t = jax.nn.one_hot(batch, num_graphs, dtype=jnp.float32).T    # (B, N)
    counts = jnp.maximum(pooln_t.sum(axis=1, keepdims=True), 1.0)       # guard empty graphs
    invc = _pad_to(1.0 / counts, (BP, 1))                               # 0 on padded rows
    pooln = _pad_to(pooln_t, (BP, NP)).astype(jnp.bfloat16)

    args = [node_in, edge_in, gN, pooln, invc]
    for lp in pparams["conv_layers"]:
        args += list(lp)
    args += list(pparams["head"])

    # cost estimate (MXU flops; gathers counted as matmuls)
    flops = 2 * num_layers * (EP * NP * CH + EP * CH * CM + EP * CM * CH
                              + NP * EP * CH + NP * CH * CM + NP * CM * CH)
    flops += 2 * (2 * BP * NP * CH + BP * CH * CD + BP * CD * CD + BP * CD * CO)
    bytes_accessed = int(sum(int(a.size) * a.dtype.itemsize for a in args) + BP * CO * 4)
    transcendentals = 2 * num_layers * (CM + CH) + 2 * CD

    # only raise the scoped-VMEM limit when the resident set would exceed the default.
    act_bytes = 8 * 4 * (EP + NP + BP) * max(CH, CM)      # rough f32 temp budget
    resident = bytes_accessed + act_bytes
    compiler_params = None
    if resident > 28 * 1024 * 1024:
        compiler_params = pltpu.CompilerParams(
            vmem_limit_bytes=min(int(1.5 * resident), 120 * 1024 * 1024))

    out_full = pl.pallas_call(
        _make_fused_kernel(num_layers, N, E2, num_graphs, hidden),
        out_shape=jax.ShapeDtypeStruct((BP, CO), jnp.float32),
        compiler_params=compiler_params,
        cost_estimate=pl.CostEstimate(flops=int(flops),
                                      transcendentals=int(transcendentals),
                                      bytes_accessed=int(bytes_accessed)),
    )(*args)
    return out_full[:num_graphs, :out_dim]


# ---------------------------------------------------------------------------
if __name__ == "__main__":
    hidden_dim, dense_dim, out_dim, num_layers = 32, 32, 4, 2
    num_node_types, num_edge_types = 5, 3
    N, E, num_graphs = 10, 12, 2

    key = jax.random.PRNGKey(0)
    kp, kx, ke, ksrc, kdst = jax.random.split(key, 5)

    params = init_params(kp, hidden_dim, dense_dim, out_dim, num_layers,
                         num_node_types, num_edge_types)
    pparams = pad_params(params, hidden_dim, dense_dim, out_dim)

    x_node = jax.random.randint(kx, (N,), 0, num_node_types)            # data.x
    edge_attr = jax.random.randint(ke, (E,), 0, num_edge_types)         # data.edge_attr
    src = jax.random.randint(ksrc, (E,), 0, N)
    dst = jax.random.randint(kdst, (E,), 0, N)
    edge_index = jnp.stack([src, dst], axis=0)                          # (2, E)
    batch = jnp.concatenate([jnp.zeros(5, jnp.int32),
                             jnp.ones(5, jnp.int32)])                   # data.batch

    out = model_forward(pparams, x_node, edge_attr, edge_index, batch, num_graphs)
    out = jax.block_until_ready(out)
    assert out.shape == (num_graphs, out_dim)
    assert jnp.all(jnp.isfinite(out))
    print("KERNEL_OK")
</pallas_src>

<mosaic_0001>
module attributes {stable_mosaic.version = 11 : i64} {
  func.func @kernel(%arg0: memref<16x128xbf16, #tpu.memory_space<vmem>>, %arg1: memref<24x128xbf16, #tpu.memory_space<vmem>>, %arg2: memref<24x16xbf16, #tpu.memory_space<vmem>>, %arg3: memref<8x16xbf16, #tpu.memory_space<vmem>>, %arg4: memref<8x1xf32, #tpu.memory_space<vmem>>, %arg5: memref<128x128xbf16, #tpu.memory_space<vmem>>, %arg6: memref<1x128xf32, #tpu.memory_space<vmem>>, %arg7: memref<1x128xf32, #tpu.memory_space<vmem>>, %arg8: memref<128x128xbf16, #tpu.memory_space<vmem>>, %arg9: memref<1x128xf32, #tpu.memory_space<vmem>>, %arg10: memref<1x128xf32, #tpu.memory_space<vmem>>, %arg11: memref<128x128xbf16, #tpu.memory_space<vmem>>, %arg12: memref<1x128xf32, #tpu.memory_space<vmem>>, %arg13: memref<1x128xf32, #tpu.memory_space<vmem>>, %arg14: memref<128x128xbf16, #tpu.memory_space<vmem>>, %arg15: memref<1x128xf32, #tpu.memory_space<vmem>>, %arg16: memref<1x128xf32, #tpu.memory_space<vmem>>, %arg17: memref<128x128xbf16, #tpu.memory_space<vmem>>, %arg18: memref<1x128xf32, #tpu.memory_space<vmem>>, %arg19: memref<1x128xf32, #tpu.memory_space<vmem>>, %arg20: memref<128x128xbf16, #tpu.memory_space<vmem>>, %arg21: memref<1x128xf32, #tpu.memory_space<vmem>>, %arg22: memref<1x128xf32, #tpu.memory_space<vmem>>, %arg23: memref<128x128xbf16, #tpu.memory_space<vmem>>, %arg24: memref<1x128xf32, #tpu.memory_space<vmem>>, %arg25: memref<1x128xf32, #tpu.memory_space<vmem>>, %arg26: memref<128x128xbf16, #tpu.memory_space<vmem>>, %arg27: memref<1x128xf32, #tpu.memory_space<vmem>>, %arg28: memref<1x128xf32, #tpu.memory_space<vmem>>, %arg29: memref<128x128xbf16, #tpu.memory_space<vmem>>, %arg30: memref<1x128xf32, #tpu.memory_space<vmem>>, %arg31: memref<1x128xf32, #tpu.memory_space<vmem>>, %arg32: memref<128x128xbf16, #tpu.memory_space<vmem>>, %arg33: memref<1x128xf32, #tpu.memory_space<vmem>>, %arg34: memref<1x128xf32, #tpu.memory_space<vmem>>, %arg35: memref<128x128xbf16, #tpu.memory_space<vmem>>, %arg36: memref<1x128xf32, #tpu.memory_space<vmem>>, %arg37: memref<8x128xf32, #tpu.memory_space<vmem>>) attributes {dimension_semantics = [], scalar_prefetch = 0 : i64, scratch_operands = 0 : i64, tpu.core_type = #tpu.core_type<tc>} {
    %c0 = arith.constant 0 : index
    %c0_0 = arith.constant 0 : index
    %0 = vector.load %arg0[%c0, %c0_0] : memref<16x128xbf16, #tpu.memory_space<vmem>>, vector<16x128xbf16>
    %c0_1 = arith.constant 0 : index
    %c0_2 = arith.constant 0 : index
    %1 = vector.load %arg1[%c0_1, %c0_2] : memref<24x128xbf16, #tpu.memory_space<vmem>>, vector<24x128xbf16>
    %c0_3 = arith.constant 0 : index
    %c0_4 = arith.constant 0 : index
    %2 = vector.load %arg2[%c0_3, %c0_4] : memref<24x16xbf16, #tpu.memory_space<vmem>>, vector<24x16xbf16>
    %c0_5 = arith.constant 0 : index
    %c0_6 = arith.constant 0 : index
    %3 = vector.load %arg3[%c0_5, %c0_6] : memref<8x16xbf16, #tpu.memory_space<vmem>>, vector<8x16xbf16>
    %c0_7 = arith.constant 0 : index
    %c0_8 = arith.constant 0 : index
    %4 = vector.load %arg4[%c0_7, %c0_8] : memref<8x1xf32, #tpu.memory_space<vmem>>, vector<8x1xf32>
    %5 = tpu.iota {dimensions = array<i32: 0>} : vector<24x1xi32>
    %6 = tpu.iota {dimensions = array<i32: 0>} : vector<16x1xi32>
    %7 = tpu.iota {dimensions = array<i32: 0>} : vector<8x1xi32>
    %c24_i32 = arith.constant 24 : i32
    %8 = vector.broadcast %c24_i32 : i32 to vector<24x1xi32>
    %9 = arith.cmpi slt, %5, %8 : vector<24x1xi32>
    %c10_i32 = arith.constant 10 : i32
    %10 = vector.broadcast %c10_i32 : i32 to vector<16x1xi32>
    %11 = arith.cmpi slt, %6, %10 : vector<16x1xi32>
    %c2_i32 = arith.constant 2 : i32
    %12 = vector.broadcast %c2_i32 : i32 to vector<8x1xi32>
    %13 = arith.cmpi slt, %7, %12 : vector<8x1xi32>
    %c2_i32_9 = arith.constant 2 : i32
    %c0_i32 = arith.constant 0 : i32
    %14 = arith.cmpi eq, %c2_i32_9, %c0_i32 : i32
    %c1_i32 = arith.constant 1 : i32
    %15 = arith.select %14, %c1_i32, %c2_i32_9 : i32
    %16 = vector.broadcast %15 : i32 to vector<24x1xi32>
    %17 = arith.remsi %5, %16 : vector<24x1xi32>
    %c0_i32_10 = arith.constant 0 : i32
    %18 = vector.broadcast %c0_i32_10 : i32 to vector<24x1xi32>
    %19 = arith.cmpi ne, %17, %18 : vector<24x1xi32>
    %c0_i32_11 = arith.constant 0 : i32
    %20 = vector.broadcast %c0_i32_11 : i32 to vector<24x1xi32>
    %21 = arith.cmpi slt, %17, %20 : vector<24x1xi32>
    %c0_i32_12 = arith.constant 0 : i32
    %22 = arith.cmpi slt, %15, %c0_i32_12 : i32
    %23 = vector.broadcast %22 : i1 to vector<24x1xi1>
    %24 = vector.broadcast %23 : vector<24x1xi1> to vector<24x1xi1>
    %25 = arith.xori %21, %24 : vector<24x1xi1>
    %26 = arith.andi %25, %19 : vector<24x1xi1>
    %27 = vector.broadcast %15 : i32 to vector<24x1xi32>
    %28 = arith.addi %17, %27 : vector<24x1xi32>
    %29 = arith.select %26, %28, %17 : vector<24x1xi1>, vector<24x1xi32>
    %c0_i32_13 = arith.constant 0 : i32
    %30 = vector.broadcast %c0_i32_13 : i32 to vector<24x1xi32>
    %31 = arith.cmpi eq, %29, %30 : vector<24x1xi32>
    %cst = arith.constant dense<0.000000e+00> : vector<24x128xf32>
    %32 = tpu.matmul %2, %0, %cst {dimension_numbers = #tpu.dot_dimension_numbers<[1], [0], [0], [1], [0, 0, 1, 1], [], []>} : vector<24x16xbf16>, vector<16x128xbf16>, vector<24x128xf32> -> vector<24x128xf32>
    %c23_i32 = arith.constant 23 : i32
    %33 = tpu.dynamic_rotate %32 by %c23_i32 dim 0 : vector<24x128xf32>, i32 -> vector<24x128xf32>
    %c1_i32_14 = arith.constant 1 : i32
    %34 = tpu.dynamic_rotate %32 by %c1_i32_14 dim 0 : vector<24x128xf32>, i32 -> vector<24x128xf32>
    %35 = vector.shape_cast %31 : vector<24x1xi1> to vector<24x1xi1>
    %36 = vector.broadcast %35 : vector<24x1xi1> to vector<24x128xi1>
    %37 = arith.select %36, %33, %34 : vector<24x128xi1>, vector<24x128xf32>
    %38 = arith.addf %32, %37 : vector<24x128xf32>
    %39 = arith.extf %1 : vector<24x128xbf16> to vector<24x128xf32>
    %c32_i32 = arith.constant 32 : i32
    %40 = tpu.dynamic_rotate %32 by %c32_i32 dim 1 : vector<24x128xf32>, i32 -> vector<24x128xf32>
    %41 = arith.addf %39, %40 : vector<24x128xf32>
    %c64_i32 = arith.constant 64 : i32
    %42 = tpu.dynamic_rotate %38 by %c64_i32 dim 1 : vector<24x128xf32>, i32 -> vector<24x128xf32>
    %43 = arith.addf %41, %42 : vector<24x128xf32>
    %44 = arith.truncf %43 : vector<24x128xf32> to vector<24x128xbf16>
    %c0_15 = arith.constant 0 : index
    %c0_16 = arith.constant 0 : index
    %45 = vector.load %arg5[%c0_15, %c0_16] : memref<128x128xbf16, #tpu.memory_space<vmem>>, vector<128x128xbf16>
    %cst_17 = arith.constant dense<0.000000e+00> : vector<24x128xf32>
    %46 = tpu.matmul %44, %45, %cst_17 {dimension_numbers = #tpu.dot_dimension_numbers<[1], [0], [0], [1], [0, 0, 1, 1], [], []>} : vector<24x128xbf16>, vector<128x128xbf16>, vector<24x128xf32> -> vector<24x128xf32>
    %c0_18 = arith.constant 0 : index
    %c0_19 = arith.constant 0 : index
    %47 = vector.load %arg6[%c0_18, %c0_19] : memref<1x128xf32, #tpu.memory_space<vmem>>, vector<1x128xf32>
    %c0_20 = arith.constant 0 : index
    %c0_21 = arith.constant 0 : index
    %48 = vector.load %arg7[%c0_20, %c0_21] : memref<1x128xf32, #tpu.memory_space<vmem>>, vector<1x128xf32>
    %cst_22 = arith.constant dense<0.000000e+00> : vector<128xf32>
    %49 = vector.multi_reduction <add>, %46, %cst_22 [0] : vector<24x128xf32> to vector<128xf32>
    %50 = vector.shape_cast %49 : vector<128xf32> to vector<1x128xf32>
    %cst_23 = arith.constant 0.0416666679 : f32
    %51 = vector.broadcast %cst_23 : f32 to vector<1x128xf32>
    %52 = arith.mulf %50, %51 : vector<1x128xf32>
    %53 = arith.mulf %46, %46 : vector<24x128xf32>
    %cst_24 = arith.constant dense<0.000000e+00> : vector<128xf32>
    %54 = vector.multi_reduction <add>, %53, %cst_24 [0] : vector<24x128xf32> to vector<128xf32>
    %55 = vector.shape_cast %54 : vector<128xf32> to vector<1x128xf32>
    %cst_25 = arith.constant 0.0416666679 : f32
    %56 = vector.broadcast %cst_25 : f32 to vector<1x128xf32>
    %57 = arith.mulf %55, %56 : vector<1x128xf32>
    %58 = arith.mulf %52, %52 : vector<1x128xf32>
    %59 = arith.subf %57, %58 : vector<1x128xf32>
    %cst_26 = arith.constant 0.000000e+00 : f32
    %60 = vector.broadcast %cst_26 : f32 to vector<1x128xf32>
    %61 = arith.maximumf %59, %60 : vector<1x128xf32>
    %cst_27 = arith.constant 9.99999974E-6 : f32
    %62 = vector.broadcast %cst_27 : f32 to vector<1x128xf32>
    %63 = arith.addf %61, %62 : vector<1x128xf32>
    %64 = math.rsqrt %63 : vector<1x128xf32>
    %65 = arith.mulf %47, %64 : vector<1x128xf32>
    %66 = arith.mulf %52, %65 : vector<1x128xf32>
    %67 = arith.subf %48, %66 : vector<1x128xf32>
    %68 = vector.broadcast %65 : vector<1x128xf32> to vector<24x128xf32>
    %69 = arith.mulf %46, %68 : vector<24x128xf32>
    %70 = vector.broadcast %67 : vector<1x128xf32> to vector<24x128xf32>
    %71 = arith.addf %69, %70 : vector<24x128xf32>
    %cst_28 = arith.constant 0.000000e+00 : f32
    %72 = vector.broadcast %cst_28 : f32 to vector<24x128xf32>
    %73 = arith.maximumf %71, %72 : vector<24x128xf32>
    %cst_29 = arith.constant 0.000000e+00 : f32
    %74 = vector.shape_cast %9 : vector<24x1xi1> to vector<24x1xi1>
    %75 = vector.broadcast %74 : vector<24x1xi1> to vector<24x128xi1>
    %76 = vector.broadcast %cst_29 : f32 to vector<24x128xf32>
    %77 = arith.select %75, %73, %76 : vector<24x128xi1>, vector<24x128xf32>
    %78 = arith.truncf %77 : vector<24x128xf32> to vector<24x128xbf16>
    %c0_30 = arith.constant 0 : index
    %c0_31 = arith.constant 0 : index
    %79 = vector.load %arg8[%c0_30, %c0_31] : memref<128x128xbf16, #tpu.memory_space<vmem>>, vector<128x128xbf16>
    %cst_32 = arith.constant dense<0.000000e+00> : vector<24x128xf32>
    %80 = tpu.matmul %78, %79, %cst_32 {dimension_numbers = #tpu.dot_dimension_numbers<[1], [0], [0], [1], [0, 0, 1, 1], [], []>} : vector<24x128xbf16>, vector<128x128xbf16>, vector<24x128xf32> -> vector<24x128xf32>
    %c0_33 = arith.constant 0 : index
    %c0_34 = arith.constant 0 : index
    %81 = vector.load %arg9[%c0_33, %c0_34] : memref<1x128xf32, #tpu.memory_space<vmem>>, vector<1x128xf32>
    %c0_35 = arith.constant 0 : index
    %c0_36 = arith.constant 0 : index
    %82 = vector.load %arg10[%c0_35, %c0_36] : memref<1x128xf32, #tpu.memory_space<vmem>>, vector<1x128xf32>
    %cst_37 = arith.constant dense<0.000000e+00> : vector<128xf32>
    %83 = vector.multi_reduction <add>, %80, %cst_37 [0] : vector<24x128xf32> to vector<128xf32>
    %84 = vector.shape_cast %83 : vector<128xf32> to vector<1x128xf32>
    %cst_38 = arith.constant 0.0416666679 : f32
    %85 = vector.broadcast %cst_38 : f32 to vector<1x128xf32>
    %86 = arith.mulf %84, %85 : vector<1x128xf32>
    %87 = arith.mulf %80, %80 : vector<24x128xf32>
    %cst_39 = arith.constant dense<0.000000e+00> : vector<128xf32>
    %88 = vector.multi_reduction <add>, %87, %cst_39 [0] : vector<24x128xf32> to vector<128xf32>
    %89 = vector.shape_cast %88 : vector<128xf32> to vector<1x128xf32>
    %cst_40 = arith.constant 0.0416666679 : f32
    %90 = vector.broadcast %cst_40 : f32 to vector<1x128xf32>
    %91 = arith.mulf %89, %90 : vector<1x128xf32>
    %92 = arith.mulf %86, %86 : vector<1x128xf32>
    %93 = arith.subf %91, %92 : vector<1x128xf32>
    %cst_41 = arith.constant 0.000000e+00 : f32
    %94 = vector.broadcast %cst_41 : f32 to vector<1x128xf32>
    %95 = arith.maximumf %93, %94 : vector<1x128xf32>
    %cst_42 = arith.constant 9.99999974E-6 : f32
    %96 = vector.broadcast %cst_42 : f32 to vector<1x128xf32>
    %97 = arith.addf %95, %96 : vector<1x128xf32>
    %98 = math.rsqrt %97 : vector<1x128xf32>
    %99 = arith.mulf %81, %98 : vector<1x128xf32>
    %100 = arith.mulf %86, %99 : vector<1x128xf32>
    %101 = arith.subf %82, %100 : vector<1x128xf32>
    %102 = vector.broadcast %99 : vector<1x128xf32> to vector<24x128xf32>
    %103 = arith.mulf %80, %102 : vector<24x128xf32>
    %104 = vector.broadcast %101 : vector<1x128xf32> to vector<24x128xf32>
    %105 = arith.addf %103, %104 : vector<24x128xf32>
    %cst_43 = arith.constant 0.000000e+00 : f32
    %106 = vector.broadcast %cst_43 : f32 to vector<24x128xf32>
    %107 = arith.maximumf %105, %106 : vector<24x128xf32>
    %cst_44 = arith.constant 0.000000e+00 : f32
    %108 = vector.shape_cast %9 : vector<24x1xi1> to vector<24x1xi1>
    %109 = vector.broadcast %108 : vector<24x1xi1> to vector<24x128xi1>
    %110 = vector.broadcast %cst_44 : f32 to vector<24x128xf32>
    %111 = arith.select %109, %107, %110 : vector<24x128xi1>, vector<24x128xf32>
    %112 = arith.truncf %111 : vector<24x128xf32> to vector<24x128xbf16>
    %cst_45 = arith.constant dense<0.000000e+00> : vector<16x128xf32>
    %113 = tpu.matmul %2, %112, %cst_45 {dimension_numbers = #tpu.dot_dimension_numbers<[0], [0], [1], [1], [0, 1, 1, 1], [], []>} : vector<24x16xbf16>, vector<24x128xbf16>, vector<16x128xf32> -> vector<16x128xf32>
    %114 = arith.extf %0 : vector<16x128xbf16> to vector<16x128xf32>
    %c32_i32_46 = arith.constant 32 : i32
    %115 = tpu.dynamic_rotate %113 by %c32_i32_46 dim 1 : vector<16x128xf32>, i32 -> vector<16x128xf32>
    %116 = arith.addf %114, %115 : vector<16x128xf32>
    %117 = arith.truncf %116 : vector<16x128xf32> to vector<16x128xbf16>
    %c0_47 = arith.constant 0 : index
    %c0_48 = arith.constant 0 : index
    %118 = vector.load %arg11[%c0_47, %c0_48] : memref<128x128xbf16, #tpu.memory_space<vmem>>, vector<128x128xbf16>
    %cst_49 = arith.constant dense<0.000000e+00> : vector<16x128xf32>
    %119 = tpu.matmul %117, %118, %cst_49 {dimension_numbers = #tpu.dot_dimension_numbers<[1], [0], [0], [1], [0, 0, 1, 1], [], []>} : vector<16x128xbf16>, vector<128x128xbf16>, vector<16x128xf32> -> vector<16x128xf32>
    %c0_50 = arith.constant 0 : index
    %c0_51 = arith.constant 0 : index
    %120 = vector.load %arg12[%c0_50, %c0_51] : memref<1x128xf32, #tpu.memory_space<vmem>>, vector<1x128xf32>
    %c0_52 = arith.constant 0 : index
    %c0_53 = arith.constant 0 : index
    %121 = vector.load %arg13[%c0_52, %c0_53] : memref<1x128xf32, #tpu.memory_space<vmem>>, vector<1x128xf32>
    %cst_54 = arith.constant dense<0.000000e+00> : vector<128xf32>
    %122 = vector.multi_reduction <add>, %119, %cst_54 [0] : vector<16x128xf32> to vector<128xf32>
    %123 = vector.shape_cast %122 : vector<128xf32> to vector<1x128xf32>
    %cst_55 = arith.constant 1.000000e-01 : f32
    %124 = vector.broadcast %cst_55 : f32 to vector<1x128xf32>
    %125 = arith.mulf %123, %124 : vector<1x128xf32>
    %126 = arith.mulf %119, %119 : vector<16x128xf32>
    %cst_56 = arith.constant dense<0.000000e+00> : vector<128xf32>
    %127 = vector.multi_reduction <add>, %126, %cst_56 [0] : vector<16x128xf32> to vector<128xf32>
    %128 = vector.shape_cast %127 : vector<128xf32> to vector<1x128xf32>
    %cst_57 = arith.constant 1.000000e-01 : f32
    %129 = vector.broadcast %cst_57 : f32 to vector<1x128xf32>
    %130 = arith.mulf %128, %129 : vector<1x128xf32>
    %131 = arith.mulf %125, %125 : vector<1x128xf32>
    %132 = arith.subf %130, %131 : vector<1x128xf32>
    %cst_58 = arith.constant 0.000000e+00 : f32
    %133 = vector.broadcast %cst_58 : f32 to vector<1x128xf32>
    %134 = arith.maximumf %132, %133 : vector<1x128xf32>
    %cst_59 = arith.constant 9.99999974E-6 : f32
    %135 = vector.broadcast %cst_59 : f32 to vector<1x128xf32>
    %136 = arith.addf %134, %135 : vector<1x128xf32>
    %137 = math.rsqrt %136 : vector<1x128xf32>
    %138 = arith.mulf %120, %137 : vector<1x128xf32>
    %139 = arith.mulf %125, %138 : vector<1x128xf32>
    %140 = arith.subf %121, %139 : vector<1x128xf32>
    %141 = vector.broadcast %138 : vector<1x128xf32> to vector<16x128xf32>
    %142 = arith.mulf %119, %141 : vector<16x128xf32>
    %143 = vector.broadcast %140 : vector<1x128xf32> to vector<16x128xf32>
    %144 = arith.addf %142, %143 : vector<16x128xf32>
    %cst_60 = arith.constant 0.000000e+00 : f32
    %145 = vector.broadcast %cst_60 : f32 to vector<16x128xf32>
    %146 = arith.maximumf %144, %145 : vector<16x128xf32>
    %cst_61 = arith.constant 0.000000e+00 : f32
    %147 = vector.shape_cast %11 : vector<16x1xi1> to vector<16x1xi1>
    %148 = vector.broadcast %147 : vector<16x1xi1> to vector<16x128xi1>
    %149 = vector.broadcast %cst_61 : f32 to vector<16x128xf32>
    %150 = arith.select %148, %146, %149 : vector<16x128xi1>, vector<16x128xf32>
    %151 = arith.truncf %150 : vector<16x128xf32> to vector<16x128xbf16>
    %c0_62 = arith.constant 0 : index
    %c0_63 = arith.constant 0 : index
    %152 = vector.load %arg14[%c0_62, %c0_63] : memref<128x128xbf16, #tpu.memory_space<vmem>>, vector<128x128xbf16>
    %cst_64 = arith.constant dense<0.000000e+00> : vector<16x128xf32>
    %153 = tpu.matmul %151, %152, %cst_64 {dimension_numbers = #tpu.dot_dimension_numbers<[1], [0], [0], [1], [0, 0, 1, 1], [], []>} : vector<16x128xbf16>, vector<128x128xbf16>, vector<16x128xf32> -> vector<16x128xf32>
    %c0_65 = arith.constant 0 : index
    %c0_66 = arith.constant 0 : index
    %154 = vector.load %arg15[%c0_65, %c0_66] : memref<1x128xf32, #tpu.memory_space<vmem>>, vector<1x128xf32>
    %c0_67 = arith.constant 0 : index
    %c0_68 = arith.constant 0 : index
    %155 = vector.load %arg16[%c0_67, %c0_68] : memref<1x128xf32, #tpu.memory_space<vmem>>, vector<1x128xf32>
    %cst_69 = arith.constant dense<0.000000e+00> : vector<128xf32>
    %156 = vector.multi_reduction <add>, %153, %cst_69 [0] : vector<16x128xf32> to vector<128xf32>
    %157 = vector.shape_cast %156 : vector<128xf32> to vector<1x128xf32>
    %cst_70 = arith.constant 1.000000e-01 : f32
    %158 = vector.broadcast %cst_70 : f32 to vector<1x128xf32>
    %159 = arith.mulf %157, %158 : vector<1x128xf32>
    %160 = arith.mulf %153, %153 : vector<16x128xf32>
    %cst_71 = arith.constant dense<0.000000e+00> : vector<128xf32>
    %161 = vector.multi_reduction <add>, %160, %cst_71 [0] : vector<16x128xf32> to vector<128xf32>
    %162 = vector.shape_cast %161 : vector<128xf32> to vector<1x128xf32>
    %cst_72 = arith.constant 1.000000e-01 : f32
    %163 = vector.broadcast %cst_72 : f32 to vector<1x128xf32>
    %164 = arith.mulf %162, %163 : vector<1x128xf32>
    %165 = arith.mulf %159, %159 : vector<1x128xf32>
    %166 = arith.subf %164, %165 : vector<1x128xf32>
    %cst_73 = arith.constant 0.000000e+00 : f32
    %167 = vector.broadcast %cst_73 : f32 to vector<1x128xf32>
    %168 = arith.maximumf %166, %167 : vector<1x128xf32>
    %cst_74 = arith.constant 9.99999974E-6 : f32
    %169 = vector.broadcast %cst_74 : f32 to vector<1x128xf32>
    %170 = arith.addf %168, %169 : vector<1x128xf32>
    %171 = math.rsqrt %170 : vector<1x128xf32>
    %172 = arith.mulf %154, %171 : vector<1x128xf32>
    %173 = arith.mulf %159, %172 : vector<1x128xf32>
    %174 = arith.subf %155, %173 : vector<1x128xf32>
    %175 = vector.broadcast %172 : vector<1x128xf32> to vector<16x128xf32>
    %176 = arith.mulf %153, %175 : vector<16x128xf32>
    %177 = vector.broadcast %174 : vector<1x128xf32> to vector<16x128xf32>
    %178 = arith.addf %176, %177 : vector<16x128xf32>
    %cst_75 = arith.constant 0.000000e+00 : f32
    %179 = vector.broadcast %cst_75 : f32 to vector<16x128xf32>
    %180 = arith.maximumf %178, %179 : vector<16x128xf32>
    %cst_76 = arith.constant 0.000000e+00 : f32
    %181 = vector.shape_cast %11 : vector<16x1xi1> to vector<16x1xi1>
    %182 = vector.broadcast %181 : vector<16x1xi1> to vector<16x128xi1>
    %183 = vector.broadcast %cst_76 : f32 to vector<16x128xf32>
    %184 = arith.select %182, %180, %183 : vector<16x128xi1>, vector<16x128xf32>
    %185 = arith.truncf %184 : vector<16x128xf32> to vector<16x128xbf16>
    %cst_77 = arith.constant dense<0.000000e+00> : vector<24x128xf32>
    %186 = tpu.matmul %2, %185, %cst_77 {dimension_numbers = #tpu.dot_dimension_numbers<[1], [0], [0], [1], [0, 0, 1, 1], [], []>} : vector<24x16xbf16>, vector<16x128xbf16>, vector<24x128xf32> -> vector<24x128xf32>
    %c23_i32_78 = arith.constant 23 : i32
    %187 = tpu.dynamic_rotate %186 by %c23_i32_78 dim 0 : vector<24x128xf32>, i32 -> vector<24x128xf32>
    %c1_i32_79 = arith.constant 1 : i32
    %188 = tpu.dynamic_rotate %186 by %c1_i32_79 dim 0 : vector<24x128xf32>, i32 -> vector<24x128xf32>
    %189 = vector.shape_cast %31 : vector<24x1xi1> to vector<24x1xi1>
    %190 = vector.broadcast %189 : vector<24x1xi1> to vector<24x128xi1>
    %191 = arith.select %190, %187, %188 : vector<24x128xi1>, vector<24x128xf32>
    %192 = arith.addf %186, %191 : vector<24x128xf32>
    %193 = arith.extf %112 : vector<24x128xbf16> to vector<24x128xf32>
    %c32_i32_80 = arith.constant 32 : i32
    %194 = tpu.dynamic_rotate %186 by %c32_i32_80 dim 1 : vector<24x128xf32>, i32 -> vector<24x128xf32>
    %195 = arith.addf %193, %194 : vector<24x128xf32>
    %c64_i32_81 = arith.constant 64 : i32
    %196 = tpu.dynamic_rotate %192 by %c64_i32_81 dim 1 : vector<24x128xf32>, i32 -> vector<24x128xf32>
    %197 = arith.addf %195, %196 : vector<24x128xf32>
    %198 = arith.truncf %197 : vector<24x128xf32> to vector<24x128xbf16>
    %c0_82 = arith.constant 0 : index
    %c0_83 = arith.constant 0 : index
    %199 = vector.load %arg17[%c0_82, %c0_83] : memref<128x128xbf16, #tpu.memory_space<vmem>>, vector<128x128xbf16>
    %cst_84 = arith.constant dense<0.000000e+00> : vector<24x128xf32>
    %200 = tpu.matmul %198, %199, %cst_84 {dimension_numbers = #tpu.dot_dimension_numbers<[1], [0], [0], [1], [0, 0, 1, 1], [], []>} : vector<24x128xbf16>, vector<128x128xbf16>, vector<24x128xf32> -> vector<24x128xf32>
    %c0_85 = arith.constant 0 : index
    %c0_86 = arith.constant 0 : index
    %201 = vector.load %arg18[%c0_85, %c0_86] : memref<1x128xf32, #tpu.memory_space<vmem>>, vector<1x128xf32>
    %c0_87 = arith.constant 0 : index
    %c0_88 = arith.constant 0 : index
    %202 = vector.load %arg19[%c0_87, %c0_88] : memref<1x128xf32, #tpu.memory_space<vmem>>, vector<1x128xf32>
    %cst_89 = arith.constant dense<0.000000e+00> : vector<128xf32>
    %203 = vector.multi_reduction <add>, %200, %cst_89 [0] : vector<24x128xf32> to vector<128xf32>
    %204 = vector.shape_cast %203 : vector<128xf32> to vector<1x128xf32>
    %cst_90 = arith.constant 0.0416666679 : f32
    %205 = vector.broadcast %cst_90 : f32 to vector<1x128xf32>
    %206 = arith.mulf %204, %205 : vector<1x128xf32>
    %207 = arith.mulf %200, %200 : vector<24x128xf32>
    %cst_91 = arith.constant dense<0.000000e+00> : vector<128xf32>
    %208 = vector.multi_reduction <add>, %207, %cst_91 [0] : vector<24x128xf32> to vector<128xf32>
    %209 = vector.shape_cast %208 : vector<128xf32> to vector<1x128xf32>
    %cst_92 = arith.constant 0.0416666679 : f32
    %210 = vector.broadcast %cst_92 : f32 to vector<1x128xf32>
    %211 = arith.mulf %209, %210 : vector<1x128xf32>
    %212 = arith.mulf %206, %206 : vector<1x128xf32>
    %213 = arith.subf %211, %212 : vector<1x128xf32>
    %cst_93 = arith.constant 0.000000e+00 : f32
    %214 = vector.broadcast %cst_93 : f32 to vector<1x128xf32>
    %215 = arith.maximumf %213, %214 : vector<1x128xf32>
    %cst_94 = arith.constant 9.99999974E-6 : f32
    %216 = vector.broadcast %cst_94 : f32 to vector<1x128xf32>
    %217 = arith.addf %215, %216 : vector<1x128xf32>
    %218 = math.rsqrt %217 : vector<1x128xf32>
    %219 = arith.mulf %201, %218 : vector<1x128xf32>
    %220 = arith.mulf %206, %219 : vector<1x128xf32>
    %221 = arith.subf %202, %220 : vector<1x128xf32>
    %222 = vector.broadcast %219 : vector<1x128xf32> to vector<24x128xf32>
    %223 = arith.mulf %200, %222 : vector<24x128xf32>
    %224 = vector.broadcast %221 : vector<1x128xf32> to vector<24x128xf32>
    %225 = arith.addf %223, %224 : vector<24x128xf32>
    %cst_95 = arith.constant 0.000000e+00 : f32
    %226 = vector.broadcast %cst_95 : f32 to vector<24x128xf32>
    %227 = arith.maximumf %225, %226 : vector<24x128xf32>
    %cst_96 = arith.constant 0.000000e+00 : f32
    %228 = vector.shape_cast %9 : vector<24x1xi1> to vector<24x1xi1>
    %229 = vector.broadcast %228 : vector<24x1xi1> to vector<24x128xi1>
    %230 = vector.broadcast %cst_96 : f32 to vector<24x128xf32>
    %231 = arith.select %229, %227, %230 : vector<24x128xi1>, vector<24x128xf32>
    %232 = arith.truncf %231 : vector<24x128xf32> to vector<24x128xbf16>
    %c0_97 = arith.constant 0 : index
    %c0_98 = arith.constant 0 : index
    %233 = vector.load %arg20[%c0_97, %c0_98] : memref<128x128xbf16, #tpu.memory_space<vmem>>, vector<128x128xbf16>
    %cst_99 = arith.constant dense<0.000000e+00> : vector<24x128xf32>
    %234 = tpu.matmul %232, %233, %cst_99 {dimension_numbers = #tpu.dot_dimension_numbers<[1], [0], [0], [1], [0, 0, 1, 1], [], []>} : vector<24x128xbf16>, vector<128x128xbf16>, vector<24x128xf32> -> vector<24x128xf32>
    %c0_100 = arith.constant 0 : index
    %c0_101 = arith.constant 0 : index
    %235 = vector.load %arg21[%c0_100, %c0_101] : memref<1x128xf32, #tpu.memory_space<vmem>>, vector<1x128xf32>
    %c0_102 = arith.constant 0 : index
    %c0_103 = arith.constant 0 : index
    %236 = vector.load %arg22[%c0_102, %c0_103] : memref<1x128xf32, #tpu.memory_space<vmem>>, vector<1x128xf32>
    %cst_104 = arith.constant dense<0.000000e+00> : vector<128xf32>
    %237 = vector.multi_reduction <add>, %234, %cst_104 [0] : vector<24x128xf32> to vector<128xf32>
    %238 = vector.shape_cast %237 : vector<128xf32> to vector<1x128xf32>
    %cst_105 = arith.constant 0.0416666679 : f32
    %239 = vector.broadcast %cst_105 : f32 to vector<1x128xf32>
    %240 = arith.mulf %238, %239 : vector<1x128xf32>
    %241 = arith.mulf %234, %234 : vector<24x128xf32>
    %cst_106 = arith.constant dense<0.000000e+00> : vector<128xf32>
    %242 = vector.multi_reduction <add>, %241, %cst_106 [0] : vector<24x128xf32> to vector<128xf32>
    %243 = vector.shape_cast %242 : vector<128xf32> to vector<1x128xf32>
    %cst_107 = arith.constant 0.0416666679 : f32
    %244 = vector.broadcast %cst_107 : f32 to vector<1x128xf32>
    %245 = arith.mulf %243, %244 : vector<1x128xf32>
    %246 = arith.mulf %240, %240 : vector<1x128xf32>
    %247 = arith.subf %245, %246 : vector<1x128xf32>
    %cst_108 = arith.constant 0.000000e+00 : f32
    %248 = vector.broadcast %cst_108 : f32 to vector<1x128xf32>
    %249 = arith.maximumf %247, %248 : vector<1x128xf32>
    %cst_109 = arith.constant 9.99999974E-6 : f32
    %250 = vector.broadcast %cst_109 : f32 to vector<1x128xf32>
    %251 = arith.addf %249, %250 : vector<1x128xf32>
    %252 = math.rsqrt %251 : vector<1x128xf32>
    %253 = arith.mulf %235, %252 : vector<1x128xf32>
    %254 = arith.mulf %240, %253 : vector<1x128xf32>
    %255 = arith.subf %236, %254 : vector<1x128xf32>
    %256 = vector.broadcast %253 : vector<1x128xf32> to vector<24x128xf32>
    %257 = arith.mulf %234, %256 : vector<24x128xf32>
    %258 = vector.broadcast %255 : vector<1x128xf32> to vector<24x128xf32>
    %259 = arith.addf %257, %258 : vector<24x128xf32>
    %cst_110 = arith.constant 0.000000e+00 : f32
    %260 = vector.broadcast %cst_110 : f32 to vector<24x128xf32>
    %261 = arith.maximumf %259, %260 : vector<24x128xf32>
    %cst_111 = arith.constant 0.000000e+00 : f32
    %262 = vector.shape_cast %9 : vector<24x1xi1> to vector<24x1xi1>
    %263 = vector.broadcast %262 : vector<24x1xi1> to vector<24x128xi1>
    %264 = vector.broadcast %cst_111 : f32 to vector<24x128xf32>
    %265 = arith.select %263, %261, %264 : vector<24x128xi1>, vector<24x128xf32>
    %266 = arith.truncf %265 : vector<24x128xf32> to vector<24x128xbf16>
    %cst_112 = arith.constant dense<0.000000e+00> : vector<16x128xf32>
    %267 = tpu.matmul %2, %266, %cst_112 {dimension_numbers = #tpu.dot_dimension_numbers<[0], [0], [1], [1], [0, 1, 1, 1], [], []>} : vector<24x16xbf16>, vector<24x128xbf16>, vector<16x128xf32> -> vector<16x128xf32>
    %268 = arith.extf %185 : vector<16x128xbf16> to vector<16x128xf32>
    %c32_i32_113 = arith.constant 32 : i32
    %269 = tpu.dynamic_rotate %267 by %c32_i32_113 dim 1 : vector<16x128xf32>, i32 -> vector<16x128xf32>
    %270 = arith.addf %268, %269 : vector<16x128xf32>
    %271 = arith.truncf %270 : vector<16x128xf32> to vector<16x128xbf16>
    %c0_114 = arith.constant 0 : index
    %c0_115 = arith.constant 0 : index
    %272 = vector.load %arg23[%c0_114, %c0_115] : memref<128x128xbf16, #tpu.memory_space<vmem>>, vector<128x128xbf16>
    %cst_116 = arith.constant dense<0.000000e+00> : vector<16x128xf32>
    %273 = tpu.matmul %271, %272, %cst_116 {dimension_numbers = #tpu.dot_dimension_numbers<[1], [0], [0], [1], [0, 0, 1, 1], [], []>} : vector<16x128xbf16>, vector<128x128xbf16>, vector<16x128xf32> -> vector<16x128xf32>
    %c0_117 = arith.constant 0 : index
    %c0_118 = arith.constant 0 : index
    %274 = vector.load %arg24[%c0_117, %c0_118] : memref<1x128xf32, #tpu.memory_space<vmem>>, vector<1x128xf32>
    %c0_119 = arith.constant 0 : index
    %c0_120 = arith.constant 0 : index
    %275 = vector.load %arg25[%c0_119, %c0_120] : memref<1x128xf32, #tpu.memory_space<vmem>>, vector<1x128xf32>
    %cst_121 = arith.constant dense<0.000000e+00> : vector<128xf32>
    %276 = vector.multi_reduction <add>, %273, %cst_121 [0] : vector<16x128xf32> to vector<128xf32>
    %277 = vector.shape_cast %276 : vector<128xf32> to vector<1x128xf32>
    %cst_122 = arith.constant 1.000000e-01 : f32
    %278 = vector.broadcast %cst_122 : f32 to vector<1x128xf32>
    %279 = arith.mulf %277, %278 : vector<1x128xf32>
    %280 = arith.mulf %273, %273 : vector<16x128xf32>
    %cst_123 = arith.constant dense<0.000000e+00> : vector<128xf32>
    %281 = vector.multi_reduction <add>, %280, %cst_123 [0] : vector<16x128xf32> to vector<128xf32>
    %282 = vector.shape_cast %281 : vector<128xf32> to vector<1x128xf32>
    %cst_124 = arith.constant 1.000000e-01 : f32
    %283 = vector.broadcast %cst_124 : f32 to vector<1x128xf32>
    %284 = arith.mulf %282, %283 : vector<1x128xf32>
    %285 = arith.mulf %279, %279 : vector<1x128xf32>
    %286 = arith.subf %284, %285 : vector<1x128xf32>
    %cst_125 = arith.constant 0.000000e+00 : f32
    %287 = vector.broadcast %cst_125 : f32 to vector<1x128xf32>
    %288 = arith.maximumf %286, %287 : vector<1x128xf32>
    %cst_126 = arith.constant 9.99999974E-6 : f32
    %289 = vector.broadcast %cst_126 : f32 to vector<1x128xf32>
    %290 = arith.addf %288, %289 : vector<1x128xf32>
    %291 = math.rsqrt %290 : vector<1x128xf32>
    %292 = arith.mulf %274, %291 : vector<1x128xf32>
    %293 = arith.mulf %279, %292 : vector<1x128xf32>
    %294 = arith.subf %275, %293 : vector<1x128xf32>
    %295 = vector.broadcast %292 : vector<1x128xf32> to vector<16x128xf32>
    %296 = arith.mulf %273, %295 : vector<16x128xf32>
    %297 = vector.broadcast %294 : vector<1x128xf32> to vector<16x128xf32>
    %298 = arith.addf %296, %297 : vector<16x128xf32>
    %cst_127 = arith.constant 0.000000e+00 : f32
    %299 = vector.broadcast %cst_127 : f32 to vector<16x128xf32>
    %300 = arith.maximumf %298, %299 : vector<16x128xf32>
    %cst_128 = arith.constant 0.000000e+00 : f32
    %301 = vector.shape_cast %11 : vector<16x1xi1> to vector<16x1xi1>
    %302 = vector.broadcast %301 : vector<16x1xi1> to vector<16x128xi1>
    %303 = vector.broadcast %cst_128 : f32 to vector<16x128xf32>
    %304 = arith.select %302, %300, %303 : vector<16x128xi1>, vector<16x128xf32>
    %305 = arith.truncf %304 : vector<16x128xf32> to vector<16x128xbf16>
    %c0_129 = arith.constant 0 : index
    %c0_130 = arith.constant 0 : index
    %306 = vector.load %arg26[%c0_129, %c0_130] : memref<128x128xbf16, #tpu.memory_space<vmem>>, vector<128x128xbf16>
    %cst_131 = arith.constant dense<0.000000e+00> : vector<16x128xf32>
    %307 = tpu.matmul %305, %306, %cst_131 {dimension_numbers = #tpu.dot_dimension_numbers<[1], [0], [0], [1], [0, 0, 1, 1], [], []>} : vector<16x128xbf16>, vector<128x128xbf16>, vector<16x128xf32> -> vector<16x128xf32>
    %c0_132 = arith.constant 0 : index
    %c0_133 = arith.constant 0 : index
    %308 = vector.load %arg27[%c0_132, %c0_133] : memref<1x128xf32, #tpu.memory_space<vmem>>, vector<1x128xf32>
    %c0_134 = arith.constant 0 : index
    %c0_135 = arith.constant 0 : index
    %309 = vector.load %arg28[%c0_134, %c0_135] : memref<1x128xf32, #tpu.memory_space<vmem>>, vector<1x128xf32>
    %cst_136 = arith.constant dense<0.000000e+00> : vector<128xf32>
    %310 = vector.multi_reduction <add>, %307, %cst_136 [0] : vector<16x128xf32> to vector<128xf32>
    %311 = vector.shape_cast %310 : vector<128xf32> to vector<1x128xf32>
    %cst_137 = arith.constant 1.000000e-01 : f32
    %312 = vector.broadcast %cst_137 : f32 to vector<1x128xf32>
    %313 = arith.mulf %311, %312 : vector<1x128xf32>
    %314 = arith.mulf %307, %307 : vector<16x128xf32>
    %cst_138 = arith.constant dense<0.000000e+00> : vector<128xf32>
    %315 = vector.multi_reduction <add>, %314, %cst_138 [0] : vector<16x128xf32> to vector<128xf32>
    %316 = vector.shape_cast %315 : vector<128xf32> to vector<1x128xf32>
    %cst_139 = arith.constant 1.000000e-01 : f32
    %317 = vector.broadcast %cst_139 : f32 to vector<1x128xf32>
    %318 = arith.mulf %316, %317 : vector<1x128xf32>
    %319 = arith.mulf %313, %313 : vector<1x128xf32>
    %320 = arith.subf %318, %319 : vector<1x128xf32>
    %cst_140 = arith.constant 0.000000e+00 : f32
    %321 = vector.broadcast %cst_140 : f32 to vector<1x128xf32>
    %322 = arith.maximumf %320, %321 : vector<1x128xf32>
    %cst_141 = arith.constant 9.99999974E-6 : f32
    %323 = vector.broadcast %cst_141 : f32 to vector<1x128xf32>
    %324 = arith.addf %322, %323 : vector<1x128xf32>
    %325 = math.rsqrt %324 : vector<1x128xf32>
    %326 = arith.mulf %308, %325 : vector<1x128xf32>
    %327 = arith.mulf %313, %326 : vector<1x128xf32>
    %328 = arith.subf %309, %327 : vector<1x128xf32>
    %329 = vector.broadcast %326 : vector<1x128xf32> to vector<16x128xf32>
    %330 = arith.mulf %307, %329 : vector<16x128xf32>
    %331 = vector.broadcast %328 : vector<1x128xf32> to vector<16x128xf32>
    %332 = arith.addf %330, %331 : vector<16x128xf32>
    %cst_142 = arith.constant 0.000000e+00 : f32
    %333 = vector.broadcast %cst_142 : f32 to vector<16x128xf32>
    %334 = arith.maximumf %332, %333 : vector<16x128xf32>
    %cst_143 = arith.constant 0.000000e+00 : f32
    %335 = vector.shape_cast %11 : vector<16x1xi1> to vector<16x1xi1>
    %336 = vector.broadcast %335 : vector<16x1xi1> to vector<16x128xi1>
    %337 = vector.broadcast %cst_143 : f32 to vector<16x128xf32>
    %338 = arith.select %336, %334, %337 : vector<16x128xi1>, vector<16x128xf32>
    %339 = arith.truncf %338 : vector<16x128xf32> to vector<16x128xbf16>
    %cst_144 = arith.constant dense<0.000000e+00> : vector<8x128xf32>
    %340 = tpu.matmul %3, %339, %cst_144 {dimension_numbers = #tpu.dot_dimension_numbers<[1], [0], [0], [1], [0, 0, 1, 1], [], []>} : vector<8x16xbf16>, vector<16x128xbf16>, vector<8x128xf32> -> vector<8x128xf32>
    %341 = vector.broadcast %4 : vector<8x1xf32> to vector<8x128xf32>
    %342 = arith.mulf %340, %341 : vector<8x128xf32>
    %343 = arith.truncf %267 : vector<16x128xf32> to vector<16x128xbf16>
    %cst_145 = arith.constant dense<0.000000e+00> : vector<8x128xf32>
    %344 = tpu.matmul %3, %343, %cst_145 {dimension_numbers = #tpu.dot_dimension_numbers<[1], [0], [0], [1], [0, 0, 1, 1], [], []>} : vector<8x16xbf16>, vector<16x128xbf16>, vector<8x128xf32> -> vector<8x128xf32>
    %345 = vector.broadcast %4 : vector<8x1xf32> to vector<8x128xf32>
    %346 = arith.mulf %344, %345 : vector<8x128xf32>
    %c32_i32_146 = arith.constant 32 : i32
    %347 = tpu.dynamic_rotate %346 by %c32_i32_146 dim 1 : vector<8x128xf32>, i32 -> vector<8x128xf32>
    %348 = arith.addf %342, %347 : vector<8x128xf32>
    %349 = arith.truncf %348 : vector<8x128xf32> to vector<8x128xbf16>
    %c0_147 = arith.constant 0 : index
    %c0_148 = arith.constant 0 : index
    %350 = vector.load %arg29[%c0_147, %c0_148] : memref<128x128xbf16, #tpu.memory_space<vmem>>, vector<128x128xbf16>
    %cst_149 = arith.constant dense<0.000000e+00> : vector<8x128xf32>
    %351 = tpu.matmul %349, %350, %cst_149 {dimension_numbers = #tpu.dot_dimension_numbers<[1], [0], [0], [1], [0, 0, 1, 1], [], []>} : vector<8x128xbf16>, vector<128x128xbf16>, vector<8x128xf32> -> vector<8x128xf32>
    %c0_150 = arith.constant 0 : index
    %c0_151 = arith.constant 0 : index
    %352 = vector.load %arg30[%c0_150, %c0_151] : memref<1x128xf32, #tpu.memory_space<vmem>>, vector<1x128xf32>
    %c0_152 = arith.constant 0 : index
    %c0_153 = arith.constant 0 : index
    %353 = vector.load %arg31[%c0_152, %c0_153] : memref<1x128xf32, #tpu.memory_space<vmem>>, vector<1x128xf32>
    %cst_154 = arith.constant dense<0.000000e+00> : vector<128xf32>
    %354 = vector.multi_reduction <add>, %351, %cst_154 [0] : vector<8x128xf32> to vector<128xf32>
    %355 = vector.shape_cast %354 : vector<128xf32> to vector<1x128xf32>
    %cst_155 = arith.constant 5.000000e-01 : f32
    %356 = vector.broadcast %cst_155 : f32 to vector<1x128xf32>
    %357 = arith.mulf %355, %356 : vector<1x128xf32>
    %358 = arith.mulf %351, %351 : vector<8x128xf32>
    %cst_156 = arith.constant dense<0.000000e+00> : vector<128xf32>
    %359 = vector.multi_reduction <add>, %358, %cst_156 [0] : vector<8x128xf32> to vector<128xf32>
    %360 = vector.shape_cast %359 : vector<128xf32> to vector<1x128xf32>
    %cst_157 = arith.constant 5.000000e-01 : f32
    %361 = vector.broadcast %cst_157 : f32 to vector<1x128xf32>
    %362 = arith.mulf %360, %361 : vector<1x128xf32>
    %363 = arith.mulf %357, %357 : vector<1x128xf32>
    %364 = arith.subf %362, %363 : vector<1x128xf32>
    %cst_158 = arith.constant 0.000000e+00 : f32
    %365 = vector.broadcast %cst_158 : f32 to vector<1x128xf32>
    %366 = arith.maximumf %364, %365 : vector<1x128xf32>
    %cst_159 = arith.constant 9.99999974E-6 : f32
    %367 = vector.broadcast %cst_159 : f32 to vector<1x128xf32>
    %368 = arith.addf %366, %367 : vector<1x128xf32>
    %369 = math.rsqrt %368 : vector<1x128xf32>
    %370 = arith.mulf %352, %369 : vector<1x128xf32>
    %371 = arith.mulf %357, %370 : vector<1x128xf32>
    %372 = arith.subf %353, %371 : vector<1x128xf32>
    %373 = vector.broadcast %370 : vector<1x128xf32> to vector<8x128xf32>
    %374 = arith.mulf %351, %373 : vector<8x128xf32>
    %375 = vector.broadcast %372 : vector<1x128xf32> to vector<8x128xf32>
    %376 = arith.addf %374, %375 : vector<8x128xf32>
    %cst_160 = arith.constant 0.000000e+00 : f32
    %377 = vector.broadcast %cst_160 : f32 to vector<8x128xf32>
    %378 = arith.maximumf %376, %377 : vector<8x128xf32>
    %cst_161 = arith.constant 0.000000e+00 : f32
    %379 = vector.shape_cast %13 : vector<8x1xi1> to vector<8x1xi1>
    %380 = vector.broadcast %379 : vector<8x1xi1> to vector<8x128xi1>
    %381 = vector.broadcast %cst_161 : f32 to vector<8x128xf32>
    %382 = arith.select %380, %378, %381 : vector<8x128xi1>, vector<8x128xf32>
    %383 = arith.truncf %382 : vector<8x128xf32> to vector<8x128xbf16>
    %c0_162 = arith.constant 0 : index
    %c0_163 = arith.constant 0 : index
    %384 = vector.load %arg32[%c0_162, %c0_163] : memref<128x128xbf16, #tpu.memory_space<vmem>>, vector<128x128xbf16>
    %cst_164 = arith.constant dense<0.000000e+00> : vector<8x128xf32>
    %385 = tpu.matmul %383, %384, %cst_164 {dimension_numbers = #tpu.dot_dimension_numbers<[1], [0], [0], [1], [0, 0, 1, 1], [], []>} : vector<8x128xbf16>, vector<128x128xbf16>, vector<8x128xf32> -> vector<8x128xf32>
    %c0_165 = arith.constant 0 : index
    %c0_166 = arith.constant 0 : index
    %386 = vector.load %arg33[%c0_165, %c0_166] : memref<1x128xf32, #tpu.memory_space<vmem>>, vector<1x128xf32>
    %c0_167 = arith.constant 0 : index
    %c0_168 = arith.constant 0 : index
    %387 = vector.load %arg34[%c0_167, %c0_168] : memref<1x128xf32, #tpu.memory_space<vmem>>, vector<1x128xf32>
    %cst_169 = arith.constant dense<0.000000e+00> : vector<128xf32>
    %388 = vector.multi_reduction <add>, %385, %cst_169 [0] : vector<8x128xf32> to vector<128xf32>
    %389 = vector.shape_cast %388 : vector<128xf32> to vector<1x128xf32>
    %cst_170 = arith.constant 5.000000e-01 : f32
    %390 = vector.broadcast %cst_170 : f32 to vector<1x128xf32>
    %391 = arith.mulf %389, %390 : vector<1x128xf32>
    %392 = arith.mulf %385, %385 : vector<8x128xf32>
    %cst_171 = arith.constant dense<0.000000e+00> : vector<128xf32>
    %393 = vector.multi_reduction <add>, %392, %cst_171 [0] : vector<8x128xf32> to vector<128xf32>
    %394 = vector.shape_cast %393 : vector<128xf32> to vector<1x128xf32>
    %cst_172 = arith.constant 5.000000e-01 : f32
    %395 = vector.broadcast %cst_172 : f32 to vector<1x128xf32>
    %396 = arith.mulf %394, %395 : vector<1x128xf32>
    %397 = arith.mulf %391, %391 : vector<1x128xf32>
    %398 = arith.subf %396, %397 : vector<1x128xf32>
    %cst_173 = arith.constant 0.000000e+00 : f32
    %399 = vector.broadcast %cst_173 : f32 to vector<1x128xf32>
    %400 = arith.maximumf %398, %399 : vector<1x128xf32>
    %cst_174 = arith.constant 9.99999974E-6 : f32
    %401 = vector.broadcast %cst_174 : f32 to vector<1x128xf32>
    %402 = arith.addf %400, %401 : vector<1x128xf32>
    %403 = math.rsqrt %402 : vector<1x128xf32>
    %404 = arith.mulf %386, %403 : vector<1x128xf32>
    %405 = arith.mulf %391, %404 : vector<1x128xf32>
    %406 = arith.subf %387, %405 : vector<1x128xf32>
    %407 = vector.broadcast %404 : vector<1x128xf32> to vector<8x128xf32>
    %408 = arith.mulf %385, %407 : vector<8x128xf32>
    %409 = vector.broadcast %406 : vector<1x128xf32> to vector<8x128xf32>
    %410 = arith.addf %408, %409 : vector<8x128xf32>
    %cst_175 = arith.constant 0.000000e+00 : f32
    %411 = vector.broadcast %cst_175 : f32 to vector<8x128xf32>
    %412 = arith.maximumf %410, %411 : vector<8x128xf32>
    %cst_176 = arith.constant 0.000000e+00 : f32
    %413 = vector.shape_cast %13 : vector<8x1xi1> to vector<8x1xi1>
    %414 = vector.broadcast %413 : vector<8x1xi1> to vector<8x128xi1>
    %415 = vector.broadcast %cst_176 : f32 to vector<8x128xf32>
    %416 = arith.select %414, %412, %415 : vector<8x128xi1>, vector<8x128xf32>
    %417 = arith.truncf %416 : vector<8x128xf32> to vector<8x128xbf16>
    %c0_177 = arith.constant 0 : index
    %c0_178 = arith.constant 0 : index
    %418 = vector.load %arg35[%c0_177, %c0_178] : memref<128x128xbf16, #tpu.memory_space<vmem>>, vector<128x128xbf16>
    %cst_179 = arith.constant dense<0.000000e+00> : vector<8x128xf32>
    %419 = tpu.matmul %417, %418, %cst_179 {dimension_numbers = #tpu.dot_dimension_numbers<[1], [0], [0], [1], [0, 0, 1, 1], [], []>} : vector<8x128xbf16>, vector<128x128xbf16>, vector<8x128xf32> -> vector<8x128xf32>
    %c0_180 = arith.constant 0 : index
    %c0_181 = arith.constant 0 : index
    %420 = vector.load %arg36[%c0_180, %c0_181] : memref<1x128xf32, #tpu.memory_space<vmem>>, vector<1x128xf32>
    %421 = vector.broadcast %420 : vector<1x128xf32> to vector<8x128xf32>
    %422 = arith.addf %419, %421 : vector<8x128xf32>
    %c0_182 = arith.constant 0 : index
    %c0_183 = arith.constant 0 : index
    %423 = vector.load %arg37[%c0_182, %c0_183] : memref<8x128xf32, #tpu.memory_space<vmem>>, vector<8x128xf32>
    tpu.vector_store %arg37[%c0_182, %c0_183], %422 {strides = array<i32>} : memref<8x128xf32, #tpu.memory_space<vmem>>, vector<8x128xf32>,
    return
  }
}

</mosaic_0001>

<bundles_post_ra>
// kernel: tpu_custom_call.1
= control target key start
LH: loop header
LB: loop body
LE: loop exit
PB: predicated region body
PF: predicated region fallthrough
CT: control target
= control target key end

     0   :  { %s3049_s6 = smov 1   ;;  %s3050_s10 = smov 2   ;;  %s3586_s0 = inlined_call_operand.smem [shape: u32[38], index: -1, kind: input, shape index: {}] }
   0x1   :  { %s3112_s5 = sld [smem:[%s3586_s0]]   ;;  %s3051_s14 = smov 3  }
   0x2   :  { %s3117_s9 = sld [smem:[%s3586_s0 + %s3049_s6]]   ;;  %s3052_s18 = smov 4  }
   0x3   :  { %s3122_s13 = sld [smem:[%s3586_s0 + %s3050_s10]]   ;;  %s3053_s22 = smov 5  }
   0x4   :  { %s3127_s17 = sld [smem:[%s3586_s0 + %s3051_s14]]   ;;  %s3054_s26 = smov 6  }
   0x5   :  { %s3132_s21 = sld [smem:[%s3586_s0 + %s3052_s18]]   ;;  %s3055_s30 = smov 7  }
   0x6   :  { %s3137_s25 = sld [smem:[%s3586_s0 + %s3053_s22]]   ;;  %s3056_s4 = smov 8  }
   0x7   :  { %s3142_s29 = sld [smem:[%s3586_s0 + %s3054_s26]]   ;;  %s3057_s10 = smov 9  }
   0x8   :  { %s3147_s3 = sld [smem:[%s3586_s0 + %s3055_s30]]   ;;  %s3058_s15 = smov 10  }
   0x9   :  { %s3152_s8 = sld [smem:[%s3586_s0 + %s3056_s4]]   ;;  %s3059_s20 = smov 11  }
   0xa   :  { %s3157_s14 = sld [smem:[%s3586_s0 + %s3057_s10]]   ;;  %s3060_s26 = smov 12  }
   0xb   :  { %3587 = sst [smem:[#allocation31_spill]] %s3132_s21  ;;  %s3061_s1 = smov 13  }
   0xc   :  { %s3162_s19 = sld [smem:[%s3586_s0 + %s3058_s15]]   ;;  %s3062_s7 = smov 14  }
   0xd   :  { %3588 = sst [smem:[#allocation32_spill]] %s3142_s29  ;;  %s3063_s15 = smov 15  }
   0xe   :  { %3589 = sst [smem:[#allocation33_spill]] %s3147_s3  ;;  %s3064_s22 = smov 16  }
   0xf   :  { %s3167_s24 = sld [smem:[%s3586_s0 + %s3059_s20]]   ;;  %s3065_s28 = smov 17  }
  0x10   :  { %3590 = sst [smem:[#allocation34_spill]] %s3157_s14 }
  0x11   :  { %s3172_s30 = sld [smem:[%s3586_s0 + %s3060_s26]]  }
  0x12   :  { %3591 = sst [smem:[#allocation35_spill]] %s3162_s19 }
  0x13   :  { %s3177_s6 = sld [smem:[%s3586_s0 + %s3061_s1]]  }
  0x14   :  { %s3182_s12 = sld [smem:[%s3586_s0 + %s3062_s7]]   ;;  %s3066_s7 = smov 18  }
  0x15   :  { %s3187_s20 = sld [smem:[%s3586_s0 + %s3063_s15]]   ;;  %s3067_s15 = smov 19  }
  0x16   :  { %s3192_s27 = sld [smem:[%s3586_s0 + %s3064_s22]]   ;;  %s3068_s22 = smov 20  }
  0x17   :  { %3592 = sst [smem:[#allocation36_spill]] %s3172_s30 }
  0x18   :  { %s3197_s4 = sld [smem:[%s3586_s0 + %s3065_s28]]   ;;  %s3069_s28 = smov 21  }
  0x19   :  { %3593 = sst [smem:[#allocation37_spill]] %s3177_s6 }
  0x1a   :  { %s3202_s21 = sld [smem:[%s3586_s0 + %s3066_s7]]   ;;  %s3070_s7 = smov 22  }
  0x1b   :  { %3594 = sst [smem:[#allocation38_spill]] %s3187_s20 }
  0x1c   :  { %3595 = sst [smem:[#allocation39_spill]] %s3192_s27 }
  0x1d   :  { %s3207_s20 = sld [smem:[%s3586_s0 + %s3067_s15]]   ;;  %s3071_s15 = smov 23  }
  0x1e   :  { %s3212_s27 = sld [smem:[%s3586_s0 + %s3068_s22]]   ;;  %s3072_s22 = smov 24  }
  0x1f   :  { %s3217_s6 = sld [smem:[%s3586_s0 + %s3069_s28]]   ;;  %s3073_s28 = smov 25  }
  0x20   :  { %3596 = sst [smem:[#allocation40_spill]] %s3202_s21 }
  0x21   :  { %s3222_s21 = sld [smem:[%s3586_s0 + %s3070_s7]]   ;;  %s3074_s7 = smov 26  }
  0x22   :  { %s3232_s30 = sld [smem:[%s3586_s0 + %s3072_s22]]   ;;  %s3076_s22 = smov 28  }
  0x23   :  { %3597 = sst [smem:[#allocation41_spill]] %s3207_s20 }
  0x24   :  { %s3227_s20 = sld [smem:[%s3586_s0 + %s3071_s15]]   ;;  %s3075_s15 = smov 27  }
  0x25   :  { %3598 = sst [smem:[#allocation42_spill]] %s3217_s6 }
  0x26   :  { %s3237_s6 = sld [smem:[%s3586_s0 + %s3073_s28]]   ;;  %s3077_s28 = smov 29  }
  0x27   :  { %3599 = sst [smem:[#allocation43_spill]] %s3222_s21 }
  0x28   :  { %3600 = sst [smem:[#allocation44_spill]] %s3232_s30 }
  0x29   :  { %s3242_s21 = sld [smem:[%s3586_s0 + %s3074_s7]]   ;;  %s3078_s7 = smov 30  }
  0x2a   :  { %s3247_s19 = sld [smem:[%s3586_s0 + %s3075_s15]]   ;;  %s3079_s15 = smov 31  }
  0x2b   :  { %s3252_s30 = sld [smem:[%s3586_s0 + %s3076_s22]]   ;;  %s3080_s22 = smov 32  }
  0x2c   :  { %3601 = sst [smem:[#allocation45_spill]] %s3237_s6 }
  0x2d   :  { %s3257_s6 = sld [smem:[%s3586_s0 + %s3077_s28]]   ;;  %s3081_s28 = smov 33  }
  0x2e   :  { %s3262_s14 = sld [smem:[%s3586_s0 + %s3078_s7]]   ;;  %s3082_s7 = smov 34  }
  0x2f   :  { %s3277_s3 = sld [smem:[%s3586_s0 + %s3081_s28]]   ;;  %s3085_s28 = smov 37  }
  0x30   :  { %3602 = sst [smem:[#allocation46_spill]] %s3247_s19 }
  0x31   :  { %3603 = sst [smem:[#allocation47_spill]] %s3252_s30 }
  0x32   :  { %s3267_s19 = sld [smem:[%s3586_s0 + %s3079_s15]]   ;;  %s3083_s15 = smov 35  }
  0x33   :  { %s3272_s30 = sld [smem:[%s3586_s0 + %s3080_s22]]   ;;  %s3084_s22 = smov 36  }
  0x34   :  { %3604 = sst [smem:[#allocation48_spill]] %s3262_s14 }
  0x35   :  { %3606 = sst [smem:[#allocation50_spill]] %s3277_s3 }
  0x36   :  { %s3282_s14 = sld [smem:[%s3586_s0 + %s3082_s7]]  }
  0x37   :  { %s3292_s29 = sld [smem:[%s3586_s0 + %s3084_s22]]  }
  0x38   :  { %3605 = sst [smem:[#allocation49_spill]] %s3267_s19 }
  0x39   :  { %s3287_s19 = sld [smem:[%s3586_s0 + %s3083_s15]]  }
  0x3a   :  { %s3297_s3 = sld [smem:[%s3586_s0 + %s3085_s28]]  }
  0x3b   :  { %80 = vsyncpa [#allocation3], 0 }
  0x3c   :  { %81 = vsyncpa [#allocation6], 0 }
  0x3d   :  { %82 = vsyncpa [#allocation9], 0 }
  0x3e   :  { %83 = vsyncpa [#allocation12], 0 }
  0x3f   :  { %84 = vsyncpa [#allocation15], 0 }
  0x40   :  { %85 = vsyncpa [#allocation18], 0 }
  0x41   :  { %86 = vsyncpa [#allocation21], 0  ;;  %s111_s7 = sshll.u32 %s3137_s25, 4  ;;  %s112_s7 = int_to_ptr.hbm [resolvable:$true] %s111_s7 }
  0x42   :  { %87 = vsyncpa [#allocation4], 0  ;;  %s3086_s10 = smov [#allocation5]   ;;  %s145_s15 = sshll.u32 %s3167_s24, 4  ;;  %s146_s15 = int_to_ptr.hbm [resolvable:$true] %s145_s15 }
  0x43   :  { %s113_s11 = sshll.u32 %s3086_s10, 4  ;;  %s2721_s0 = sshra.s32 %s112_s7, 4  ;;  %s114_s11 = int_to_ptr.vmem [resolvable:$true] %s113_s11  ;;  %s2722_s0 = int_to_ptr.hbm [resolvable:$true] %s2721_s0 }
  0x44   :  { %s2723_s16 = scalar_lea.hbm %s2722_s0, 64  ;;  %s2725_s18 = scalar_lea.hbm %s3137_s25, 64 }
  0x45   :  { %p2724_p0 = scmp.ne.s32.totalorder %s2722_s0, %s2723_s16  ;;  %p2726_p1 = scmp.lt.s32.totalorder %s2722_s0, %s3137_s25 }
  0x46   :  { %p2727_p2 = scmp.lt.s32.totalorder %s2725_s18, %s2723_s16 }
  0x48   :  { %p2728_p3 = por %p2727_p2, %p2726_p1 }
  0x4a   :  { %p2729_p4 = pnand %p2728_p3, %p2724_p0 }
  0x4c   :  { %2732 = shalt.err (!%p2729_p4)
}
  0x4d   :  { %s3087_s22 = smov 64   ;;  %s3088_s23 = smov 4  }
  0x4e   :  { %119 = dma.hbm_to_vmem [thread:$0]  %s112_s7, 1024, %s114_s11, [#allocation6], %s3087_s22, %s3087_s22, %s3088_s23  }
  0x4f   :  { %s3089_s26 = smov [#allocation8]   ;;  %s179_s1 = sshll.u32 %s3197_s4, 4  ;;  %s3307_s1 = int_to_ptr.hbm [resolvable:$true] %s179_s1 }
  0x50   :  { %s147_s28 = sshll.u32 %s3089_s26, 4  ;;  %s2745_s25 = sshra.s32 %s146_s15, 4  ;;  %s148_s28 = int_to_ptr.vmem [resolvable:$true] %s147_s28  ;;  %s2746_s25 = int_to_ptr.hbm [resolvable:$true] %s2745_s25 }
  0x51   :  { %s2747_s2 = scalar_lea.hbm %s2746_s25, 64  ;;  %s2749_s10 = scalar_lea.hbm %s3167_s24, 64 }
  0x52   :  { %p2748_p5 = scmp.ne.s32.totalorder %s2746_s25, %s2747_s2  ;;  %p2750_p6 = scmp.lt.s32.totalorder %s2746_s25, %s3167_s24 }
  0x53   :  { %p2751_p7 = scmp.lt.s32.totalorder %s2749_s10, %s2747_s2 }
  0x55   :  { %p2752_p8 = por %p2751_p7, %p2750_p6 }
  0x57   :  { %p2753_p9 = pnand %p2752_p8, %p2748_p5 }
  0x59   :  { %2756 = shalt.err (!%p2753_p9)
}
  0x5a   :  { %153 = dma.hbm_to_vmem [thread:$0]  %s146_s15, 1024, %s148_s28, [#allocation9], %s3087_s22, %s3087_s22, %s3088_s23  }
  0x5b   :  { %s213_s7 = sshll.u32 %s3227_s20, 4  ;;  %s3090_s11 = smov [#allocation11]   ;;  %s3315_s7 = int_to_ptr.hbm [resolvable:$true] %s213_s7 }
  0x5c   :  { %s181_s0 = sshll.u32 %s3090_s11, 4  ;;  %s2769_s16 = sshra.s32 %s3307_s1, 4  ;;  %s182_s0 = int_to_ptr.vmem [resolvable:$true] %s181_s0  ;;  %s2770_s16 = int_to_ptr.hbm [resolvable:$true] %s2769_s16 }
  0x5d   :  { %s2771_s24 = scalar_lea.hbm %s2770_s16, 64  ;;  %s2773_s18 = scalar_lea.hbm %s3197_s4, 64 }
  0x5e   :  { %p2772_p10 = scmp.ne.s32.totalorder %s2770_s16, %s2771_s24  ;;  %p2774_p11 = scmp.lt.s32.totalorder %s2770_s16, %s3197_s4 }
  0x5f   :  { %p2775_p12 = scmp.lt.s32.totalorder %s2773_s18, %s2771_s24 }
  0x61   :  { %p2776_p13 = por %p2775_p12, %p2774_p11 }
  0x63   :  { %p2777_p0 = pnand %p2776_p13, %p2772_p10 }
  0x65   :  { %2780 = shalt.err (!%p2777_p0)
}
  0x66   :  { %187 = dma.hbm_to_vmem [thread:$0]  %s3307_s1, 1024, %s182_s0, [#allocation12], %s3087_s22, %s3087_s22, %s3088_s23  }
  0x67   :  { %s3091_s15 = smov [#allocation14]   ;;  %s247_s28 = sshll.u32 %s3257_s6, 4  ;;  %s3325_s28 = int_to_ptr.hbm [resolvable:$true] %s247_s28 }
  0x68   :  { %s215_s26 = sshll.u32 %s3091_s15, 4  ;;  %s2793_s4 = sshra.s32 %s3315_s7, 4  ;;  %s216_s26 = int_to_ptr.vmem [resolvable:$true] %s215_s26  ;;  %s2794_s4 = int_to_ptr.hbm [resolvable:$true] %s2793_s4 }
  0x69   :  { %s2795_s25 = scalar_lea.hbm %s2794_s4, 64  ;;  %s2797_s2 = scalar_lea.hbm %s3227_s20, 64 }
  0x6a   :  { %p2796_p1 = scmp.ne.s32.totalorder %s2794_s4, %s2795_s25  ;;  %p2798_p2 = scmp.lt.s32.totalorder %s2794_s4, %s3227_s20 }
  0x6b   :  { %p2799_p3 = scmp.lt.s32.totalorder %s2797_s2, %s2795_s25 }
  0x6d   :  { %p2800_p4 = por %p2799_p3, %p2798_p2 }
  0x6f   :  { %p2801_p5 = pnand %p2800_p4, %p2796_p1 }
  0x71   :  { %2804 = shalt.err (!%p2801_p5)
}
  0x72   :  { %221 = dma.hbm_to_vmem [thread:$0]  %s3315_s7, 1024, %s216_s26, [#allocation15], %s3087_s22, %s3087_s22, %s3088_s23  }
  0x73   :  { %s99_s1 = sshll.u32 %s3127_s17, 4  ;;  %s3092_s10 = smov [#allocation17]   ;;  %s100_s1 = int_to_ptr.hbm [resolvable:$true] %s99_s1 }
  0x74   :  { %s249_s11 = sshll.u32 %s3092_s10, 4  ;;  %s2817_s0 = sshra.s32 %s3325_s28, 4  ;;  %s250_s11 = int_to_ptr.vmem [resolvable:$true] %s249_s11  ;;  %s2818_s0 = int_to_ptr.hbm [resolvable:$true] %s2817_s0 }
  0x75   :  { %s2819_s20 = scalar_lea.hbm %s2818_s0, 64  ;;  %s2821_s16 = scalar_lea.hbm %s3257_s6, 64 }
  0x76   :  { %p2820_p6 = scmp.ne.s32.totalorder %s2818_s0, %s2819_s20  ;;  %p2822_p7 = scmp.lt.s32.totalorder %s2818_s0, %s3257_s6 }
  0x77   :  { %p2823_p8 = scmp.lt.s32.totalorder %s2821_s16, %s2819_s20 }
  0x79   :  { %p2824_p9 = por %p2823_p8, %p2822_p7 }
  0x7b   :  { %p2825_p10 = pnand %p2824_p9, %p2820_p6 }
  0x7d   :  { %2828 = shalt.err (!%p2825_p10)
}
  0x7e   :  { %255 = dma.hbm_to_vmem [thread:$0]  %s3325_s28, 1024, %s250_s11, [#allocation18], %s3087_s22, %s3087_s22, %s3088_s23  }
  0x7f   :  { %s3093_s7 = smov [#allocation2]   ;;  %s128_s18 = sshll.u32 %s3152_s8, 4  ;;  %s3343_s18 = int_to_ptr.hbm [resolvable:$true] %s128_s18 }
  0x80   :  { %s101_s24 = sshll.u32 %s3093_s7, 4  ;;  %s2841_s15 = sshra.s32 %s100_s1, 4  ;;  %s102_s24 = int_to_ptr.vmem [resolvable:$true] %s101_s24  ;;  %s2842_s15 = int_to_ptr.hbm [resolvable:$true] %s2841_s15 }
  0x81   :  { %s2843_s6 = scalar_lea.hbm %s2842_s15, 4  ;;  %s2845_s26 = scalar_lea.hbm %s3127_s17, 4 }
  0x82   :  { %p2844_p11 = scmp.ne.s32.totalorder %s2842_s15, %s2843_s6  ;;  %p2846_p12 = scmp.lt.s32.totalorder %s2842_s15, %s3127_s17 }
  0x83   :  { %p2847_p13 = scmp.lt.s32.totalorder %s2845_s26, %s2843_s6 }
  0x85   :  { %p2848_p0 = por %p2847_p13, %p2846_p12 }
  0x87   :  { %p2849_p1 = pnand %p2848_p0, %p2844_p11 }
  0x89   :  { %2852 = shalt.err (!%p2849_p1)
}
  0x8a   :  { %104 = dma.hbm_to_vmem [thread:$0]  %s100_s1, 64, %s102_s24, [#allocation3]  }
  0x8b   :  { %s162_s28 = sshll.u32 %s3182_s12, 4  ;;  %s3094_s4 = smov [#allocation7]   ;;  %s3348_s28 = int_to_ptr.hbm [resolvable:$true] %s162_s28 }
  0x8c   :  { %s130_s25 = sshll.u32 %s3094_s4, 4  ;;  %s2865_s2 = sshra.s32 %s3343_s18, 4  ;;  %s131_s25 = int_to_ptr.vmem [resolvable:$true] %s130_s25  ;;  %s2866_s2 = int_to_ptr.hbm [resolvable:$true] %s2865_s2 }
  0x8d   :  { %s2867_s10 = scalar_lea.hbm %s2866_s2, 64  ;;  %s2869_s17 = scalar_lea.hbm %s3152_s8, 64 }
  0x8e   :  { %p2868_p2 = scmp.ne.s32.totalorder %s2866_s2, %s2867_s10  ;;  %p2870_p3 = scmp.lt.s32.totalorder %s2866_s2, %s3152_s8 }
  0x8f   :  { %p2871_p4 = scmp.lt.s32.totalorder %s2869_s17, %s2867_s10 }
  0x91   :  { %p2872_p5 = por %p2871_p4, %p2870_p3 }
  0x93   :  { %p2873_p6 = pnand %p2872_p5, %p2868_p2 }
  0x95   :  { %2876 = shalt.err (!%p2873_p6)
}
  0x96   :  { %136 = dma.hbm_to_vmem [thread:$0]  %s3343_s18, 1024, %s131_s25, [#allocation6], %s3087_s22, %s3087_s22, %s3088_s23  }
  0x97   :  { %s3095_s1 = smov [#allocation10]   ;;  %s196_s0 = sshll.u32 %s3212_s27, 4  ;;  %s3358_s0 = int_to_ptr.hbm [resolvable:$true] %s196_s0 }
  0x98   :  { %s164_s11 = sshll.u32 %s3095_s1, 4  ;;  %s2889_s8 = sshra.s32 %s3348_s28, 4  ;;  %s165_s11 = int_to_ptr.vmem [resolvable:$true] %s164_s11  ;;  %s2890_s8 = int_to_ptr.hbm [resolvable:$true] %s2889_s8 }
  0x99   :  { %s2891_s20 = scalar_lea.hbm %s2890_s8, 64  ;;  %s2893_s16 = scalar_lea.hbm %s3182_s12, 64 }
  0x9a   :  { %p2892_p7 = scmp.ne.s32.totalorder %s2890_s8, %s2891_s20  ;;  %p2894_p8 = scmp.lt.s32.totalorder %s2890_s8, %s3182_s12 }
  0x9b   :  { %p2895_p9 = scmp.lt.s32.totalorder %s2893_s16, %s2891_s20 }
  0x9d   :  { %p2896_p10 = por %p2895_p9, %p2894_p8 }
  0x9f   :  { %p2897_p11 = pnand %p2896_p10, %p2892_p7 }
  0xa1   :  { %2900 = shalt.err (!%p2897_p11)
}
  0xa2   :  { %170 = dma.hbm_to_vmem [thread:$0]  %s3348_s28, 1024, %s165_s11, [#allocation9], %s3087_s22, %s3087_s22, %s3088_s23  }
  0xa3   :  { %s230_s7 = sshll.u32 %s3242_s21, 4  ;;  %s3096_s24 = smov [#allocation13]   ;;  %s3368_s7 = int_to_ptr.hbm [resolvable:$true] %s230_s7 }
  0xa4   :  { %s198_s18 = sshll.u32 %s3096_s24, 4  ;;  %s2913_s12 = sshra.s32 %s3358_s0, 4  ;;  %s199_s18 = int_to_ptr.vmem [resolvable:$true] %s198_s18  ;;  %s2914_s12 = int_to_ptr.hbm [resolvable:$true] %s2913_s12 }
  0xa5   :  { %s2915_s15 = scalar_lea.hbm %s2914_s12, 64  ;;  %s2917_s6 = scalar_lea.hbm %s3212_s27, 64 }
  0xa6   :  { %p2916_p12 = scmp.ne.s32.totalorder %s2914_s12, %s2915_s15  ;;  %p2918_p13 = scmp.lt.s32.totalorder %s2914_s12, %s3212_s27 }
  0xa7   :  { %p2919_p0 = scmp.lt.s32.totalorder %s2917_s6, %s2915_s15 }
  0xa9   :  { %p2920_p1 = por %p2919_p0, %p2918_p13 }
  0xab   :  { %p2921_p2 = pnand %p2920_p1, %p2916_p12 }
  0xad   :  { %2924 = shalt.err (!%p2921_p2)
}
  0xae   :  { %204 = dma.hbm_to_vmem [thread:$0]  %s3358_s0, 1024, %s199_s18, [#allocation12], %s3087_s22, %s3087_s22, %s3088_s23  }
  0xaf   :  { %s3097_s26 = smov [#allocation16]   ;;  %s264_s4 = sshll.u32 %s3272_s30, 4  ;;  %s3378_s4 = int_to_ptr.hbm [resolvable:$true] %s264_s4 }
  0xb0   :  { %s232_s28 = sshll.u32 %s3097_s26, 4  ;;  %s2937_s27 = sshra.s32 %s3368_s7, 4  ;;  %s233_s28 = int_to_ptr.vmem [resolvable:$true] %s232_s28  ;;  %s2938_s27 = int_to_ptr.hbm [resolvable:$true] %s2937_s27 }
  0xb1   :  { %s2939_s25 = scalar_lea.hbm %s2938_s27, 64  ;;  %s2941_s2 = scalar_lea.hbm %s3242_s21, 64 }
  0xb2   :  { %p2940_p3 = scmp.ne.s32.totalorder %s2938_s27, %s2939_s25  ;;  %p2942_p4 = scmp.lt.s32.totalorder %s2938_s27, %s3242_s21 }
  0xb3   :  { %p2943_p5 = scmp.lt.s32.totalorder %s2941_s2, %s2939_s25 }
  0xb5   :  { %p2944_p6 = por %p2943_p5, %p2942_p4 }
  0xb7   :  { %p2945_p7 = pnand %p2944_p6, %p2940_p3 }
  0xb9   :  { %2948 = shalt.err (!%p2945_p7)
}
  0xba   :  { %238 = dma.hbm_to_vmem [thread:$0]  %s3368_s7, 1024, %s233_s28, [#allocation15], %s3087_s22, %s3087_s22, %s3088_s23  }
  0xbb   :  { %s281_s10 = sshll.u32 %s3287_s19, 4  ;;  %s3098_s17 = smov [#allocation19]   ;;  %s3388_s10 = int_to_ptr.hbm [resolvable:$true] %s281_s10 }
  0xbc   :  { %s266_s1 = sshll.u32 %s3098_s17, 4  ;;  %s2961_s21 = sshra.s32 %s3378_s4, 4  ;;  %s267_s1 = int_to_ptr.vmem [resolvable:$true] %s266_s1  ;;  %s2962_s21 = int_to_ptr.hbm [resolvable:$true] %s2961_s21 }
  0xbd   :  { %s2963_s11 = scalar_lea.hbm %s2962_s21, 64  ;;  %s2965_s0 = scalar_lea.hbm %s3272_s30, 64 }
  0xbe   :  { %p2964_p8 = scmp.ne.s32.totalorder %s2962_s21, %s2963_s11  ;;  %p2966_p9 = scmp.lt.s32.totalorder %s2962_s21, %s3272_s30 }
  0xbf   :  { %p2967_p10 = scmp.lt.s32.totalorder %s2965_s0, %s2963_s11 }
  0xc1   :  { %p2968_p11 = por %p2967_p10, %p2966_p9 }
  0xc3   :  { %p2969_p12 = pnand %p2968_p11, %p2964_p8 }
  0xc5   :  { %2972 = shalt.err (!%p2969_p12)
}
  0xc6   :  { %272 = dma.hbm_to_vmem [thread:$0]  %s3378_s4, 1024, %s267_s1, [#allocation18], %s3087_s22, %s3087_s22, %s3088_s23  }
  0xc7   :  { %s3099_s8 = smov [#allocation20]   ;;  %s2985_s16 = sshra.s32 %s3388_s10, 4  ;;  %s2986_s16 = int_to_ptr.hbm [resolvable:$true] %s2985_s16 }
  0xc8   :  { %s283_s20 = sshll.u32 %s3099_s8, 4  ;;  %s2987_s7 = scalar_lea.hbm %s2986_s16, 64  ;;  %s284_s20 = int_to_ptr.vmem [resolvable:$true] %s283_s20 }
  0xc9   :  { %p2988_p13 = scmp.ne.s32.totalorder %s2986_s16, %s2987_s7  ;;  %s2989_s30 = scalar_lea.hbm %s3287_s19, 64 }
  0xca   :  { %p2990_p0 = scmp.lt.s32.totalorder %s2986_s16, %s3287_s19  ;;  %p2991_p1 = scmp.lt.s32.totalorder %s2989_s30, %s2987_s7 }
  0xcc   :  { %p2992_p2 = por %p2991_p1, %p2990_p0 }
  0xce   :  { %p2993_p3 = pnand %p2992_p2, %p2988_p13 }
  0xd0   :  { %2996 = shalt.err (!%p2993_p3)
}
  0xd1   :  { %289 = dma.hbm_to_vmem [thread:$0]  %s3388_s10, 1024, %s284_s20, [#allocation21], %s3087_s22, %s3087_s22, %s3088_s23  }
  0xd2   :  { %3033 = dma.done.wait [#allocation3], 64  }
  0xd3   :  { %3034 = vsyncadd [#allocation3], 4294967232 }
  0xd4   :  { %3035 = dma.done.wait [#allocation6], 2048  }
  0xd5   :  { %3036 = vsyncadd [#allocation6], 4294965248 }
  0xd6   :  { %3037 = dma.done.wait [#allocation9], 2048  }
  0xd7   :  { %3038 = vsyncadd [#allocation9], 4294965248 }
  0xd8   :  { %3039 = dma.done.wait [#allocation12], 2048  }
  0xd9   :  { %3040 = vsyncadd [#allocation12], 4294965248 }
  0xda   :  { %3041 = dma.done.wait [#allocation15], 2048  }
  0xdb   :  { %3042 = vsyncadd [#allocation15], 4294965248 }
  0xdc   :  { %3043 = dma.done.wait [#allocation18], 2048  }
  0xdd   :  { %3044 = vsyncadd [#allocation18], 4294965248 }
  0xde   :  { %3045 = dma.done.wait [#allocation21], 1024  }
  0xdf   :  { %3046 = vsyncadd [#allocation21], 4294966272  ;;  %v2549_v0 = vld [vmem:[%s3112_s5] sm:$0xff]  ;;  %vm414_vm0 = vcmask 130048   ;;  %v348_v2 = vld [vmem:[%s3122_s13 + $0x8] sm:$0xf]  ;;  %v351_v6 = vlaneseq }
  0xe0   :  { %v3406_v1 = vld [vmem:[%s3122_s13] sm:$0xff]  ;;  %428 = vmatpush.bf16.msra.mxu0 %v2549_v0  ;;  %v405_v3 = vunpack.c.l.b16 %v348_v2  ;;  %s3100_s19 = smov 32   ;;  %v2557_v38 = vld [vmem:[#allocation5 + $0x30] sm:$0xff]  ;;  %v2556_v39 = vld [vmem:[#allocation5 + $0x28] sm:$0xff]  ;;  %s3614_s13 = sld [smem:[#allocation33_spill]]  ;;  %vm810_vm12 = vcmask 1043456  }
  0xe1   :  { %v3416_v7 = vshrl.u32 %v351_v6, 7  ;;  %v2558_v37 = vld [vmem:[#allocation5 + $0x38] sm:$0xff]  ;;  %v2555_v40 = vld [vmem:[#allocation5 + $0x20] sm:$0xff]  ;;  %v2553_v42 = vld [vmem:[#allocation5 + $0x10] sm:$0xff]  ;;  %s3615_s23 = sld [smem:[#allocation34_spill]]  ;;  %vm806_vm13 = vcmask 195584  }
  0xe2   :  { %v3411_v4 = vpack.c.b16 %v405_v3, %v405_v3  ;;  %552 = vmatpush.bf16.msra.mxu1 %v2558_v37  ;;  %v2554_v41 = vld [vmem:[#allocation5 + $0x18] sm:$0xff]  ;;  %v2552_v43 = vld [vmem:[#allocation5 + $0x8] sm:$0xff]  ;;  %v2551_v44 = vld [vmem:[#allocation5] sm:$0xff]  ;;  %s3616_s24 = sld [smem:[#allocation35_spill]]  ;;  %s3103_s11 = smov [#allocation22]  }
  0xe3   :  { %2174 = vmatmul.msk.bf16.vlgmr.msra.gmra.mxu0 %vm414_vm0, %v3406_v1  ;;  %v354_v9 = vadd.s32 16, %v3416_v7  ;;  %v365_v10 = vand.u32 1, %v3416_v7  ;;  %v3422_v12 = vadd.s32 8, %v3416_v7  ;;  %vm442_vm2 = vcmp.lt.s32.totalorder %v3416_v7, 7  ;;  %v2640_v46 = vld [vmem:[%s3117_s9] sm:$0xff]   ;;  %v2560_v37 = vld [vmem:[#allocation7 + $0x8] sm:$0xff] }
  0xe4   :  { %vm449_vm4 = vcmp.lt.s32.totalorder %v3416_v7, 1  ;;  %v2641_v48 = vunpack.c.l.bf16 %v2640_v46  ;;  %v2642_v49 = vunpack.c.h.bf16 %v2640_v46  ;;  %v345_v58 = vld [vmem:[%s3117_s9 + $0x8] sm:$0xf]  ;;  %v2566_v3 = vld [vmem:[#allocation7 + $0x38] sm:$0xff]  ;;  %s3613_s9 = sld [smem:[#allocation32_spill]]  ;;  %s2111_s0 = sshll.u32 %s3103_s11, 4  ;;  %s2112_s0 = int_to_ptr.vmem [resolvable:$true] %s2111_s0 }
  0xe5   :  { %v379_v11 = vand.u32 1, %v354_v9  ;;  %vm3424_vm1 = vcmp.eq.s32.totalorder %v365_v10, 0  ;;  %v372_v22 = vand.u32 1, %v3422_v12  ;;  %v467_v59 = vunpack.c.l.bf16 %v345_v58  ;;  %700 = vmatpush.bf16.msra.mxu2 %v2566_v3  ;;  %s3618_s18 = sld [smem:[#allocation37_spill]]  ;;  %v2590_v31 = vld [vmem:[#allocation11 + $0x38] sm:$0xff]  ;;  %v2583_v17 = vld [vmem:[#allocation11] sm:$0xff] }
  0xe6   :  { %553 = vmatpush.bf16.msra.mxu1 %v2557_v38  ;;  %s3621_s12 = sld [smem:[#allocation38_spill]]  ;;  %s2113_s8 = sshll.u32 %s3297_s3, 4  ;;  %s2114_s8 = int_to_ptr.hbm [resolvable:$true] %s2113_s8 }
  0xe7   :  { %vm3429_vm3 = vcmp.eq.s32.totalorder %v379_v11, 0  ;;  %vm3449_vm5 = vcmp.eq.s32.totalorder %v372_v22, 0  ;;  %v2564_v11 = vld [vmem:[#allocation7 + $0x28] sm:$0xff]  ;;  %s3622_s15 = sld [smem:[#allocation39_spill]]  ;;  %s3025_s16 = scalar_lea.hbm %s3297_s3, 8 }
  0xe8   :  { %s3624_s6 = sld [smem:[#allocation41_spill]] }
  0xe9   :  { %s3625_s26 = sld [smem:[#allocation42_spill]] }
  0xea   :  { %554 = vmatpush.bf16.msra.mxu1 %v2556_v39  ;;  %s3626_s28 = sld [smem:[#allocation43_spill]] }
  0xeb   :  { %s3627_s4 = sld [smem:[#allocation44_spill]] }
  0xec   :  { %s3628_s27 = sld [smem:[#allocation45_spill]] }
  0xed   :  { %s3629_s25 = sld [smem:[#allocation46_spill]] }
  0xee   :  { %555 = vmatpush.bf16.msra.mxu1 %v2555_v40  ;;  %v2559_v40 = vld [vmem:[#allocation7] sm:$0xff]  ;;  %s3630_s2 = sld [smem:[#allocation47_spill]] }
  0xef   :  { %s3631_s10 = sld [smem:[#allocation31_spill]] }
  0xf0   :  { %s3632_s17 = sld [smem:[#allocation48_spill]] }
  0xf1   :  { %s3633_s1 = sld [smem:[#allocation49_spill]] }
  0xf2   :  { %556 = vmatpush.bf16.msra.mxu1 %v2554_v41  ;;  %s3636_s21 = sld [smem:[#allocation50_spill]] }
  0xf3   :  { %2175 = vmatmul.msk.bf16.gmra.mxu0 %vm414_vm0, %v3411_v4 }
  0xf6   :  { %557 = vmatpush.bf16.msra.mxu1 %v2553_v42 }
  0xfa   :  { %558 = vmatpush.bf16.msra.mxu1 %v2552_v43 }
  0xfe   :  { %559 = vmatpush.bf16.msra.mxu1 %v2551_v44 }
 0x102   :  { %1231 = vmatpush.bf16.msrb.mxu1 %v2590_v31  ;;  %v2591_v31 = vld [vmem:[#allocation13] sm:$0xff] }
 0x160   :  { %v430_v5 = vpop.f32.mrf.mxu0 }
 0x161   :  { %468 = vrot.lane.b32.xlu0 %v430_v5, %s3100_s19  ;;  %v439_v14 = vrot.slane %v430_v5, 1  ;;  %v446_v18 = vrot.slane %v430_v5, 7 }
 0x168   :  { %v432_v8 = vpop.f32.mrf.mxu0 }
 0x169   :  { %470 = vrot.lane.b32.xlu0 %v432_v8, %s3100_s19  ;;  %v440_v13 = vrot.slane %v432_v8, 1  ;;  %v447_v19 = vrot.slane %v432_v8, 7 }
 0x16b   :  { %v444_v23 = vsel %vm442_vm2, %v439_v14, %v440_v13  ;;  %v451_v34 = vsel %vm449_vm4, %v446_v18, %v447_v19 }
 0x170   :  { %v435_v15 = vpop.f32.mrf.mxu0 }
 0x171   :  { %v441_v20 = vrot.slane %v435_v15, 1  ;;  %v448_v21 = vrot.slane %v435_v15, 7  ;;  %472 = vrot.lane.b32.xlu2 %v435_v15, %s3100_s19 }
 0x173   :  { %v452_v24 = vsel %vm449_vm4, %v448_v21, %v446_v18  ;;  %v445_v25 = vsel %vm442_vm2, %v441_v20, %v439_v14  ;;  %v450_v26 = vsel %vm449_vm4, %v447_v19, %v448_v21  ;;  %v443_v32 = vsel %vm442_vm2, %v440_v13, %v441_v20  ;;  %v2563_v20 = vld [vmem:[#allocation7 + $0x20] sm:$0xff] }
 0x174   :  { %v459_v27 = vsel %vm3424_vm1, %v444_v23, %v452_v24  ;;  %v461_v28 = vsel %vm3429_vm3, %v445_v25, %v450_v26  ;;  %v460_v35 = vsel %vm3449_vm5, %v443_v32, %v451_v34  ;;  %v2562_v26 = vld [vmem:[#allocation7 + $0x18] sm:$0xff]  ;;  %v2561_v32 = vld [vmem:[#allocation7 + $0x10] sm:$0xff] }
 0x175   :  { %v462_v29 = vadd.f32 %v459_v27, %v430_v5  ;;  %v464_v30 = vadd.f32 %v461_v28, %v435_v15  ;;  %v463_v36 = vadd.f32 %v460_v35, %v432_v8  ;;  %v2565_v5 = vld [vmem:[#allocation7 + $0x30] sm:$0xff] }
 0x176   :  { %701 = vmatpush.bf16.msra.mxu2 %v2565_v5 }
 0x177   :  { %477 = vrot.lane.b32.xlu1 %v462_v29, %s3087_s22 }
 0x178   :  { %v437_v33 = vpop.f32.mrf.mxu0 }
 0x179   :  { %481 = vrot.lane.b32.xlu2 %v464_v30, %s3087_s22 }
 0x17a   :  { %702 = vmatpush.bf16.msra.mxu2 %v2564_v11 }
 0x17e   :  { %703 = vmatpush.bf16.msra.mxu2 %v2563_v20 }
 0x17f   :  { %479 = vrot.lane.b32.xlu1 %v463_v36, %s3087_s22 }
 0x182   :  { %704 = vmatpush.bf16.msra.mxu2 %v2562_v26 }
 0x186   :  { %705 = vmatpush.bf16.msra.mxu2 %v2561_v32 }
 0x18a   :  { %706 = vmatpush.bf16.msra.mxu2 %v2560_v37 }
 0x18b   :  { %781 = vxpose.xlu0.c.b16.start [1/2] (short) (narrow) %v3406_v1, 16 }
 0x18e   :  { %707 = vmatpush.bf16.msra.mxu2 %v2559_v40 }
 0x19b   :  { %782 = vxpose.xlu0.c.b16.end [2/2] (short) (narrow) %v3411_v4, 16 }
 0x1cb   :  { %v473_v56 = vpop.permute.xlu2 %472 }
 0x1cc   :  { %v476_v61 = vadd.f32 %v473_v56, %v467_v59 }
 0x1d3   :  { %v469_v45 = vpop.permute.xlu0 %468  ;;  %v482_v60 = vpop.permute.xlu2 %481 }
 0x1d4   :  { %v474_v51 = vadd.f32 %v2641_v48, %v469_v45  ;;  %v485_v62 = vadd.f32 %v482_v60, %v476_v61 }
 0x1d6   :  { %v487_v63 = vpack.c.bf16 %v485_v62, %v485_v62 }
 0x1db   :  { %v471_v50 = vpop.permute.xlu0 %470 }
 0x1dc   :  { %v475_v52 = vadd.f32 %v2642_v49, %v471_v50  ;;  %v570_v49 = vld [vmem:[%s3613_s9] sm:$0x1] }
 0x1e9   :  { %v478_v47 = vpop.permute.xlu1 %477 }
 0x1ea   :  { %v483_v54 = vadd.f32 %v478_v47, %v474_v51 }
 0x1f1   :  { %v480_v53 = vpop.permute.xlu1 %479 }
 0x1f2   :  { %v484_v55 = vadd.f32 %v480_v53, %v475_v52  ;;  %v571_v53 = vld [vmem:[%s3614_s13] sm:$0x1] }
 0x1f4   :  { %v486_v57 = vpack.c.bf16 %v484_v55, %v483_v54 }
 0x1f6   :  { %560 = vmatmul.bf16.vlgmr.msra.gmra.mxu1 %v486_v57 }
 0x206   :  { %565 = vmatmul.bf16.gmra.mxu1 %v487_v63 }
 0x273   :  { %v561_v0 = vpop.f32.mrf.mxu1 }
 0x274   :  { %v581_v8 = vmul.f32 %v561_v0, %v561_v0 }
 0x27b   :  { %v563_v2 = vpop.f32.mrf.mxu1 }
 0x27c   :  { %v582_v6 = vmul.f32 %v563_v2, %v563_v2  ;;  %v572_v9 = vadd.f32 %v563_v2, %v561_v0 }
 0x27e   :  { %v584_v13 = vadd.f32 %v582_v6, %v581_v8 }
 0x283   :  { %v566_v10 = vpop.f32.mrf.mxu1 }
 0x284   :  { %v573_v14 = vadd.f32 %v572_v9, %v566_v10  ;;  %v583_v15 = vmul.f32 %v566_v10, %v566_v10 }
 0x286   :  { %v574_v18 = vrot.slane %v573_v14, 4  ;;  %v585_v19 = vadd.f32 %v584_v13, %v583_v15 }
 0x288   :  { %v575_v21 = vadd.f32 %v574_v18, %v573_v14  ;;  %v586_v22 = vrot.slane %v585_v19, 4 }
 0x28a   :  { %v576_v23 = vrot.slane %v575_v21, 2  ;;  %v587_v24 = vadd.f32 %v586_v22, %v585_v19 }
 0x28b   :  { %v568_v25 = vpop.f32.mrf.mxu1 }
 0x28c   :  { %v577_v27 = vadd.f32 %v576_v23, %v575_v21  ;;  %v588_v28 = vrot.slane %v587_v24, 2 }
 0x28e   :  { %v578_v29 = vrot.slane %v577_v27, 1  ;;  %v589_v30 = vadd.f32 %v588_v28, %v587_v24 }
 0x290   :  { %v579_v33 = vadd.f32 %v578_v29, %v577_v27  ;;  %v590_v34 = vrot.slane %v589_v30, 1 }
 0x292   :  { %v580_v35 = vmul.f32 0.041666668, %v579_v33  ;;  %v591_v36 = vadd.f32 %v590_v34, %v589_v30 }
 0x294   :  { %v592_v38 = vmul.f32 0.041666668, %v591_v36  ;;  %v593_v39 = vmul.f32 %v580_v35, %v580_v35 }
 0x296   :  { %v594_v41 = vsub.f32 %v592_v38, %v593_v39 }
 0x298   :  { %v595_v42 = vmax.f32 %v594_v41, 0.0 }
 0x29a   :  { %v596_v43 = vadd.f32 1e-05, %v595_v42 }
 0x29c   :  { %2701 = vrsqrt.f32 %v596_v43  ;;  %vm603_vm7 = vweird.f32 %v596_v43 }
 0x2a2   :  { %v2702_v44 = vpop.eup %2701 }
 0x2a3   :  { %v598_v45 = vmul.f32 %v2702_v44, %v596_v43  ;;  %vm604_vm6 = vweird.f32 %v2702_v44 }
 0x2a4   :  { %vm605_vm8 = vmor %vm603_vm7, %vm604_vm6  ;;  %vm359_vm7 = vcmp.lt.s32.totalorder %v3422_v12, 10 }
 0x2a5   :  { %v599_v46 = vmul.f32 %v2702_v44, %v598_v45 }
 0x2a7   :  { %v600_v47 = vmul.f32 0.5, %v599_v46  ;;  %v718_v46 = vld [vmem:[%s3615_s23] sm:$0x1] }
 0x2a9   :  { %v601_v48 = vsub.f32 1.5, %v600_v47 }
 0x2ab   :  { %v602_v50 = vmul.f32 %v2702_v44, %v601_v48 }
 0x2ad   :  { %v606_v51 = vsel %vm605_vm8, %v2702_v44, %v602_v50  ;;  %v719_v50 = vld [vmem:[%s3616_s24] sm:$0x1]  ;;  %vm3101_vm8 = vmmov 1  }
 0x2ae   :  { %v607_v52 = vmul.f32 %v606_v51, %v570_v49 }
 0x2b0   :  { %v611_v54 = vperm.slane %v607_v52, 0  ;;  %v608_v55 = vmul.f32 %v607_v52, %v580_v35 }
 0x2b2   :  { %v609_v56 = vsub.f32 %v571_v53, %v608_v55  ;;  %v613_v57 = vmul.f32 %v611_v54, %v561_v0  ;;  %v614_v58 = vmul.f32 %v611_v54, %v563_v2  ;;  %v615_v5 = vmul.f32 %v611_v54, %v566_v10 }
 0x2b4   :  { %v617_v59 = vperm.slane %v609_v56, 0 }
 0x2b6   :  { %v619_v60 = vadd.f32 %v617_v59, %v613_v57  ;;  %v620_v61 = vadd.f32 %v617_v59, %v614_v58  ;;  %v621_v6 = vadd.f32 %v617_v59, %v615_v5 }
 0x2b8   :  { %v622_v62 = vmax.f32 %v619_v60, 0.0  ;;  %v623_v63 = vmax.f32 %v620_v61, 0.0  ;;  %v624_v8 = vmax.f32 %v621_v6, 0.0 }
 0x2ba   :  { %v634_v3 = vpack.c.bf16 %v623_v63, %v622_v62  ;;  %v635_v9 = vpack.c.bf16 %v624_v8, %v624_v8 }
 0x2bc   :  { %708 = vmatmul.bf16.vlgmr.msra.gmra.mxu2 %v634_v3 }
 0x2cc   :  { %713 = vmatmul.bf16.gmra.mxu2 %v635_v9 }
 0x33f   :  { %v709_v11 = vpop.f32.mrf.mxu2 }
 0x340   :  { %v729_v15 = vmul.f32 %v709_v11, %v709_v11 }
 0x347   :  { %v711_v13 = vpop.f32.mrf.mxu2 }
 0x348   :  { %v730_v14 = vmul.f32 %v711_v13, %v711_v13  ;;  %v720_v18 = vadd.f32 %v711_v13, %v709_v11 }
 0x34a   :  { %v732_v0 = vadd.f32 %v730_v14, %v729_v15 }
 0x34f   :  { %v714_v19 = vpop.f32.mrf.mxu2 }
 0x350   :  { %v721_v2 = vadd.f32 %v720_v18, %v714_v19  ;;  %v731_v20 = vmul.f32 %v714_v19, %v714_v19  ;;  %v3479_v18 = vpop.trf.xlu0 }
 0x352   :  { %v722_v21 = vrot.slane %v721_v2, 4  ;;  %v733_v22 = vadd.f32 %v732_v0, %v731_v20  ;;  %v2573_v0 = vld [vmem:[#allocation8 + $0x30] sm:$0xff] }
 0x354   :  { %v723_v23 = vadd.f32 %v722_v21, %v721_v2  ;;  %v734_v24 = vrot.slane %v733_v22, 4  ;;  %v2572_v2 = vld [vmem:[#allocation8 + $0x28] sm:$0xff] }
 0x356   :  { %v724_v25 = vrot.slane %v723_v23, 2  ;;  %v735_v26 = vadd.f32 %v734_v24, %v733_v22  ;;  %v2571_v22 = vld [vmem:[#allocation8 + $0x20] sm:$0xff]  ;;  %v2569_v24 = vld [vmem:[#allocation8 + $0x10] sm:$0xff] }
 0x357   :  { %v716_v10 = vpop.f32.mrf.mxu2 }
 0x358   :  { %v725_v27 = vadd.f32 %v724_v25, %v723_v23  ;;  %v736_v28 = vrot.slane %v735_v26, 2  ;;  %v2570_v23 = vld [vmem:[#allocation8 + $0x18] sm:$0xff]  ;;  %v2568_v25 = vld [vmem:[#allocation8 + $0x8] sm:$0xff] }
 0x359   :  { %v342_v10 = vld [vmem:[%s3112_s5] sm:$0xff]   ;;  %s3617_s5 = sld [smem:[#allocation36_spill]] }
 0x35a   :  { %v726_v29 = vrot.slane %v725_v27, 1  ;;  %v737_v30 = vadd.f32 %v736_v28, %v735_v26  ;;  %v2567_v26 = vld [vmem:[#allocation8] sm:$0xff]  ;;  %v828_v28 = vunpack.c.l.bf16 %v342_v10 }
 0x35c   :  { %v727_v32 = vadd.f32 %v726_v29, %v725_v27  ;;  %v738_v33 = vrot.slane %v737_v30, 1  ;;  %v829_v27 = vunpack.c.h.bf16 %v342_v10 }
 0x35e   :  { %v728_v34 = vmul.f32 0.041666668, %v727_v32  ;;  %v739_v35 = vadd.f32 %v738_v33, %v737_v30 }
 0x360   :  { %v740_v36 = vmul.f32 0.041666668, %v739_v35  ;;  %v741_v37 = vmul.f32 %v728_v34, %v728_v34 }
 0x362   :  { %v742_v38 = vsub.f32 %v740_v36, %v741_v37  ;;  %v2582_v36 = vld [vmem:[#allocation10 + $0x38] sm:$0xff]  ;;  %v2581_v37 = vld [vmem:[#allocation10 + $0x30] sm:$0xff] }
 0x364   :  { %v743_v39 = vmax.f32 %v742_v38, 0.0 }
 0x366   :  { %v744_v40 = vadd.f32 1e-05, %v743_v39  ;;  %v2580_v39 = vld [vmem:[#allocation10 + $0x28] sm:$0xff] }
 0x368   :  { %2703 = vrsqrt.f32 %v744_v40  ;;  %vm751_vm10 = vweird.f32 %v744_v40 }
 0x36e   :  { %v2704_v41 = vpop.eup %2703 }
 0x36f   :  { %v746_v42 = vmul.f32 %v2704_v41, %v744_v40  ;;  %vm752_vm9 = vweird.f32 %v2704_v41 }
 0x370   :  { %vm753_vm11 = vmor %vm751_vm10, %vm752_vm9 }
 0x371   :  { %v747_v43 = vmul.f32 %v2704_v41, %v746_v42  ;;  %vm3491_vm9 = vmpackc.low %vm359_vm7, %vm3101_vm8 }
 0x373   :  { %v748_v44 = vmul.f32 0.5, %v747_v43 }
 0x375   :  { %v749_v45 = vsub.f32 1.5, %v748_v44 }
 0x377   :  { %v750_v47 = vmul.f32 %v2704_v41, %v749_v45  ;;  %v2579_v45 = vld [vmem:[#allocation10 + $0x20] sm:$0xff] }
 0x379   :  { %v754_v48 = vsel %vm753_vm11, %v2704_v41, %v750_v47 }
 0x37a   :  { %v755_v49 = vmul.f32 %v754_v48, %v718_v46 }
 0x37c   :  { %v756_v51 = vmul.f32 %v755_v49, %v728_v34  ;;  %v759_v52 = vperm.slane %v755_v49, 0 }
 0x37e   :  { %v757_v53 = vsub.f32 %v719_v50, %v756_v51  ;;  %v763_v54 = vmul.f32 %v759_v52, %v714_v19  ;;  %v761_v56 = vmul.f32 %v759_v52, %v709_v11  ;;  %v762_v57 = vmul.f32 %v759_v52, %v711_v13  ;;  %v2574_v19 = vld [vmem:[#allocation8 + $0x38] sm:$0xff] }
 0x37f   :  { %901 = vmatpush.bf16.msrb.mxu0 %v2574_v19  ;;  %v2578_v50 = vld [vmem:[#allocation10 + $0x18] sm:$0xff] }
 0x380   :  { %v765_v55 = vperm.slane %v757_v53, 0 }
 0x382   :  { %v769_v58 = vadd.f32 %v765_v55, %v763_v54  ;;  %v767_v59 = vadd.f32 %v765_v55, %v761_v56  ;;  %v768_v60 = vadd.f32 %v765_v55, %v762_v57  ;;  %v2577_v55 = vld [vmem:[#allocation10 + $0x10] sm:$0xff] }
 0x383   :  { %902 = vmatpush.bf16.msrb.mxu0 %v2573_v0 }
 0x384   :  { %v772_v61 = vmax.f32 %v769_v58, 0.0  ;;  %v770_v62 = vmax.f32 %v767_v59, 0.0  ;;  %v771_v63 = vmax.f32 %v768_v60, 0.0  ;;  %v2576_v60 = vld [vmem:[#allocation10 + $0x8] sm:$0xff] }
 0x386   :  { %v3469_v3 = vpack.c.bf16 %v772_v61, %v772_v61  ;;  %v3471_v5 = vpack.c.bf16 %v770_v62, %v770_v62  ;;  %v3473_v6 = vpack.c.bf16 %v771_v63, %v771_v63 }
 0x387   :  { %903 = vmatpush.bf16.msrb.mxu0 %v2572_v2  ;;  %v915_v2 = vld [vmem:[%s3617_s5] sm:$0x1] }
 0x388   :  { %v802_v8 = vunpack.c.l.b16 %v3469_v3  ;;  %v800_v14 = vunpack.c.l.b16 %v3471_v5  ;;  %v801_v11 = vunpack.c.l.b16 %v3473_v6 }
 0x38a   :  { %v804_v9 = vpack.c.b16 %v802_v8, %v802_v8  ;;  %v803_v15 = vpack.c.b16 %v801_v11, %v800_v14  ;;  %v2575_v8 = vld [vmem:[#allocation10] sm:$0xff] }
 0x38b   :  { %904 = vmatpush.bf16.msrb.mxu0 %v2571_v22 }
 0x38c   :  { %v812_v13 = vsel %vm810_vm12, %v804_v9, 0 }
 0x38d   :  { %820 = vmatpush.bf16.msra.mxu3 %v812_v13 }
 0x38f   :  { %905 = vmatpush.bf16.msrb.mxu0 %v2570_v23  ;;  %v916_v23 = vld [vmem:[%s3618_s18] sm:$0x1] }
 0x391   :  { %821 = vmatpush.bf16.msra.mxu3 %v803_v15 }
 0x393   :  { %906 = vmatpush.bf16.msrb.mxu0 %v2569_v24 }
 0x394   :  { %2240 = vmatmul.msk.bf16.vlgmr.msra.gmra.mxu3 %vm806_vm13, %v3479_v18 }
 0x395   :  { %1035 = vmatpush.bf16.msrb.mxu3 %v2582_v36 }
 0x397   :  { %907 = vmatpush.bf16.msrb.mxu0 %v2568_v25 }
 0x399   :  { %1036 = vmatpush.bf16.msrb.mxu3 %v2581_v37 }
 0x39b   :  { %908 = vmatpush.bf16.msrb.mxu0 %v2567_v26 }
 0x39d   :  { %1037 = vmatpush.bf16.msrb.mxu3 %v2580_v39 }
 0x3a1   :  { %1038 = vmatpush.bf16.msrb.mxu3 %v2579_v45 }
 0x3a5   :  { %1039 = vmatpush.bf16.msrb.mxu3 %v2578_v50 }
 0x3a9   :  { %1040 = vmatpush.bf16.msrb.mxu3 %v2577_v55 }
 0x3ad   :  { %1041 = vmatpush.bf16.msrb.mxu3 %v2576_v60 }
 0x3b1   :  { %1042 = vmatpush.bf16.msrb.mxu3 %v2575_v8 }
 0x417   :  { %v823_v20 = vpop.f32.mrf.mxu3 }
 0x418   :  { %830 = vrot.lane.b32.xlu1 %v823_v20, %s3100_s19 }
 0x41f   :  { %v825_v21 = vpop.f32.mrf.mxu3 }
 0x420   :  { %832 = vrot.lane.b32.xlu2 %v825_v21, %s3100_s19 }
 0x47a   :  { %v833_v29 = vpop.permute.xlu2 %832 }
 0x47b   :  { %v835_v32 = vadd.f32 %v833_v29, %v829_v27 }
 0x48a   :  { %v831_v30 = vpop.permute.xlu1 %830 }
 0x48b   :  { %v834_v33 = vadd.f32 %v831_v30, %v828_v28 }
 0x48d   :  { %v836_v34 = vpack.c.bf16 %v835_v32, %v834_v33 }
 0x48f   :  { %909 = vmatmul.bf16.vlgmr.msrb.gmra.mxu0 %v836_v34 }
 0x50c   :  { %v910_v35 = vpop.f32.mrf.mxu0 }
 0x50d   :  { %v925_v40 = vmul.f32 %v910_v35, %v910_v35 }
 0x514   :  { %v912_v38 = vpop.f32.mrf.mxu0 }
 0x515   :  { %v917_v41 = vadd.f32 %v912_v38, %v910_v35  ;;  %v926_v42 = vmul.f32 %v912_v38, %v912_v38 }
 0x517   :  { %v918_v43 = vrot.slane %v917_v41, 4  ;;  %v927_v44 = vadd.f32 %v926_v42, %v925_v40 }
 0x519   :  { %v919_v46 = vadd.f32 %v918_v43, %v917_v41  ;;  %v928_v47 = vrot.slane %v927_v44, 4 }
 0x51b   :  { %v920_v48 = vrot.slane %v919_v46, 2  ;;  %v929_v49 = vadd.f32 %v928_v47, %v927_v44 }
 0x51d   :  { %v921_v51 = vadd.f32 %v920_v48, %v919_v46  ;;  %v930_v52 = vrot.slane %v929_v49, 2 }
 0x51f   :  { %v922_v53 = vrot.slane %v921_v51, 1  ;;  %v931_v54 = vadd.f32 %v930_v52, %v929_v49 }
 0x521   :  { %v923_v56 = vadd.f32 %v922_v53, %v921_v51  ;;  %v932_v57 = vrot.slane %v931_v54, 1 }
 0x523   :  { %v924_v58 = vmul.f32 0.1, %v923_v56  ;;  %v933_v59 = vadd.f32 %v932_v57, %v931_v54 }
 0x525   :  { %v934_v61 = vmul.f32 0.1, %v933_v59  ;;  %v935_v62 = vmul.f32 %v924_v58, %v924_v58 }
 0x527   :  { %v936_v63 = vsub.f32 %v934_v61, %v935_v62 }
 0x529   :  { %v937_v9 = vmax.f32 %v936_v63, 0.0 }
 0x52b   :  { %v938_v14 = vadd.f32 1e-05, %v937_v9  ;;  %v1049_v9 = vld [vmem:[%s3621_s12] sm:$0x1] }
 0x52d   :  { %2705 = vrsqrt.f32 %v938_v14  ;;  %vm945_vm15 = vweird.f32 %v938_v14 }
 0x533   :  { %v2706_v11 = vpop.eup %2705 }
 0x534   :  { %v940_v13 = vmul.f32 %v2706_v11, %v938_v14  ;;  %vm946_vm14 = vweird.f32 %v2706_v11 }
 0x535   :  { %vm947_vm6 = vmor %vm945_vm15, %vm946_vm14 }
 0x536   :  { %v941_v15 = vmul.f32 %v2706_v11, %v940_v13 }
 0x538   :  { %v942_v19 = vmul.f32 0.5, %v941_v15  ;;  %v1050_v15 = vld [vmem:[%s3622_s15] sm:$0x1] }
 0x53a   :  { %v943_v0 = vsub.f32 1.5, %v942_v19 }
 0x53c   :  { %v944_v20 = vmul.f32 %v2706_v11, %v943_v0 }
 0x53e   :  { %v948_v21 = vsel %vm947_vm6, %v2706_v11, %v944_v20 }
 0x53f   :  { %v949_v22 = vmul.f32 %v948_v21, %v915_v2 }
 0x541   :  { %v950_v24 = vmul.f32 %v949_v22, %v924_v58  ;;  %v953_v25 = vperm.slane %v949_v22, 0 }
 0x543   :  { %v951_v26 = vsub.f32 %v916_v23, %v950_v24  ;;  %v955_v10 = vmul.f32 %v953_v25, %v910_v35  ;;  %v956_v27 = vmul.f32 %v953_v25, %v912_v38 }
 0x545   :  { %v958_v28 = vperm.slane %v951_v26, 0 }
 0x547   :  { %v960_v29 = vadd.f32 %v958_v28, %v955_v10  ;;  %v961_v30 = vadd.f32 %v958_v28, %v956_v27 }
 0x549   :  { %v963_v32 = vmax.f32 %v961_v30, 0.0  ;;  %v962_v33 = vmax.f32 %v960_v29, 0.0 }
 0x54b   :  { %v2306_v36 = vpack.c.bf16 %v963_v32, %v962_v33 }
 0x54d   :  { %2307 = vmatmul.msk.bf16.vlgmr.msrb.gmra.mxu3 %vm3491_vm9, %v2306_v36 }
 0x5d0   :  { %v1044_v35 = vpop.f32.mrf.mxu3 }
 0x5d1   :  { %v1059_v38 = vmul.f32 %v1044_v35, %v1044_v35 }
 0x5d8   :  { %v1046_v37 = vpop.f32.mrf.mxu3 }
 0x5d9   :  { %v1051_v39 = vadd.f32 %v1046_v37, %v1044_v35  ;;  %v1060_v40 = vmul.f32 %v1046_v37, %v1046_v37 }
 0x5db   :  { %v1052_v41 = vrot.slane %v1051_v39, 4  ;;  %v1061_v42 = vadd.f32 %v1060_v40, %v1059_v38 }
 0x5dd   :  { %v1053_v43 = vadd.f32 %v1052_v41, %v1051_v39  ;;  %v1062_v44 = vrot.slane %v1061_v42, 4 }
 0x5df   :  { %v1054_v45 = vrot.slane %v1053_v43, 2  ;;  %v1063_v46 = vadd.f32 %v1062_v44, %v1061_v42 }
 0x5e1   :  { %v1055_v47 = vadd.f32 %v1054_v45, %v1053_v43  ;;  %v1064_v48 = vrot.slane %v1063_v46, 2 }
 0x5e3   :  { %v1056_v49 = vrot.slane %v1055_v47, 1  ;;  %v1065_v50 = vadd.f32 %v1064_v48, %v1063_v46 }
 0x5e5   :  { %v1057_v51 = vadd.f32 %v1056_v49, %v1055_v47  ;;  %v1066_v52 = vrot.slane %v1065_v50, 1 }
 0x5e7   :  { %v1058_v53 = vmul.f32 0.1, %v1057_v51  ;;  %v1067_v54 = vadd.f32 %v1066_v52, %v1065_v50  ;;  %v2589_v52 = vld [vmem:[#allocation11 + $0x30] sm:$0xff] }
 0x5e8   :  { %1232 = vmatpush.bf16.msrb.mxu1 %v2589_v52 }
 0x5e9   :  { %v1068_v55 = vmul.f32 0.1, %v1067_v54  ;;  %v1069_v56 = vmul.f32 %v1058_v53, %v1058_v53  ;;  %v2587_v54 = vld [vmem:[#allocation11 + $0x20] sm:$0xff] }
 0x5eb   :  { %v1070_v57 = vsub.f32 %v1068_v55, %v1069_v56  ;;  %v2586_v55 = vld [vmem:[#allocation11 + $0x18] sm:$0xff]  ;;  %v2585_v56 = vld [vmem:[#allocation11 + $0x10] sm:$0xff] }
 0x5ed   :  { %v1071_v58 = vmax.f32 %v1070_v57, 0.0  ;;  %v2584_v57 = vld [vmem:[#allocation11 + $0x8] sm:$0xff] }
 0x5ef   :  { %v1072_v59 = vadd.f32 1e-05, %v1071_v58 }
 0x5f1   :  { %2707 = vrsqrt.f32 %v1072_v59  ;;  %vm1079_vm11 = vweird.f32 %v1072_v59 }
 0x5f7   :  { %v2708_v60 = vpop.eup %2707 }
 0x5f8   :  { %v1074_v61 = vmul.f32 %v2708_v60, %v1072_v59  ;;  %vm1080_vm10 = vweird.f32 %v2708_v60 }
 0x5f9   :  { %vm1081_vm14 = vmor %vm1079_vm11, %vm1080_vm10 }
 0x5fa   :  { %v1075_v62 = vmul.f32 %v2708_v60, %v1074_v61  ;;  %v1144_v61 = vunpack.c.l.bf16 %v3471_v5 }
 0x5fc   :  { %v1076_v63 = vmul.f32 0.5, %v1075_v62 }
 0x5fe   :  { %v1077_v8 = vsub.f32 1.5, %v1076_v63 }
 0x600   :  { %v1078_v14 = vmul.f32 %v2708_v60, %v1077_v8 }
 0x602   :  { %v1082_v11 = vsel %vm1081_vm14, %v2708_v60, %v1078_v14  ;;  %v1145_v60 = vunpack.c.l.bf16 %v3473_v6  ;;  %vm360_vm14 = vcmp.lt.s32.totalorder %v3416_v7, 2 }
 0x603   :  { %v1083_v13 = vmul.f32 %v1082_v11, %v1049_v9 }
 0x605   :  { %v1084_v19 = vmul.f32 %v1083_v13, %v1058_v53  ;;  %v1087_v0 = vperm.slane %v1083_v13, 0  ;;  %v2588_v53 = vld [vmem:[#allocation11 + $0x28] sm:$0xff] }
 0x606   :  { %1233 = vmatpush.bf16.msrb.mxu1 %v2588_v53 }
 0x607   :  { %v1085_v2 = vsub.f32 %v1050_v15, %v1084_v19  ;;  %v1089_v20 = vmul.f32 %v1087_v0, %v1044_v35  ;;  %v1090_v21 = vmul.f32 %v1087_v0, %v1046_v37  ;;  %v1146_v19 = vunpack.c.l.bf16 %v3469_v3 }
 0x609   :  { %v1092_v22 = vperm.slane %v1085_v2, 0 }
 0x60a   :  { %1234 = vmatpush.bf16.msrb.mxu1 %v2587_v54 }
 0x60b   :  { %v1094_v23 = vadd.f32 %v1092_v22, %v1089_v20  ;;  %v1095_v24 = vadd.f32 %v1092_v22, %v1090_v21 }
 0x60d   :  { %v1096_v25 = vmax.f32 %v1094_v23, 0.0  ;;  %v1097_v26 = vmax.f32 %v1095_v24, 0.0  ;;  %v2598_v23 = vld [vmem:[#allocation13 + $0x38] sm:$0xff]  ;;  %v2597_v24 = vld [vmem:[#allocation13 + $0x30] sm:$0xff] }
 0x60e   :  { %1235 = vmatpush.bf16.msrb.mxu1 %v2586_v55  ;;  %1373 = vmatpush.bf16.msrb.mxu2 %v2598_v23 }
 0x60f   :  { %v1099_v10 = vsel %vm359_vm7, %v1097_v26, 0.0  ;;  %v3501_v27 = vpack.c.bf16 %v1096_v25, %v1096_v25 }
 0x610   :  { %v3503_v28 = vpack.c.bf16 %v1099_v10, %v1099_v10 }
 0x611   :  { %v1104_v29 = vunpack.c.l.b16 %v3501_v27 }
 0x612   :  { %v1105_v30 = vunpack.c.l.b16 %v3503_v28  ;;  %1236 = vmatpush.bf16.msrb.mxu1 %v2585_v56  ;;  %1374 = vmatpush.bf16.msrb.mxu2 %v2597_v24 }
 0x614   :  { %v1106_v32 = vpack.c.b16 %v1105_v30, %v1104_v29 }
 0x616   :  { %1115 = vmatpush.bf16.msra.mxu0 %v1106_v32  ;;  %1237 = vmatpush.bf16.msrb.mxu1 %v2584_v57 }
 0x619   :  { %2308 = vmatmul.msk.bf16.vlgmr.msra.gmra.mxu0 %vm414_vm0, %v3406_v1 }
 0x61a   :  { %1238 = vmatpush.bf16.msrb.mxu1 %v2583_v17 }
 0x629   :  { %2309 = vmatmul.msk.bf16.gmra.mxu0 %vm414_vm0, %v3411_v4 }
 0x696   :  { %v1117_v33 = vpop.f32.mrf.mxu0 }
 0x697   :  { %1147 = vrot.lane.b32.xlu1 %v1117_v33, %s3100_s19  ;;  %v1126_v38 = vrot.slane %v1117_v33, 1  ;;  %v1132_v39 = vrot.slane %v1117_v33, 7 }
 0x69e   :  { %v1119_v12 = vpop.f32.mrf.mxu0 }
 0x69f   :  { %1149 = vrot.lane.b32.xlu2 %v1119_v12, %s3100_s19  ;;  %v1127_v36 = vrot.slane %v1119_v12, 1  ;;  %v1133_v35 = vrot.slane %v1119_v12, 7 }
 0x6a1   :  { %v1130_v42 = vsel %vm442_vm2, %v1126_v38, %v1127_v36  ;;  %v1136_v43 = vsel %vm449_vm4, %v1132_v39, %v1133_v35 }
 0x6a6   :  { %v1122_v37 = vpop.f32.mrf.mxu0 }
 0x6a7   :  { %v1128_v40 = vrot.slane %v1122_v37, 1  ;;  %v1134_v41 = vrot.slane %v1122_v37, 7 }
 0x6a9   :  { %v1137_v1 = vsel %vm449_vm4, %v1134_v41, %v1132_v39  ;;  %v1129_v4 = vsel %vm442_vm2, %v1127_v36, %v1128_v40  ;;  %v1131_v48 = vsel %vm442_vm2, %v1128_v40, %v1126_v38  ;;  %v1135_v49 = vsel %vm449_vm4, %v1133_v35, %v1134_v41 }
 0x6aa   :  { %v1138_v44 = vsel %vm3424_vm1, %v1130_v42, %v1137_v1  ;;  %v1139_v45 = vsel %vm3449_vm5, %v1129_v4, %v1136_v43  ;;  %v1140_v16 = vsel %vm3429_vm3, %v1131_v48, %v1135_v49  ;;  %v2594_v1 = vld [vmem:[#allocation13 + $0x18] sm:$0xff]  ;;  %v2592_v49 = vld [vmem:[#allocation13 + $0x8] sm:$0xff] }
 0x6ab   :  { %v1141_v46 = vadd.f32 %v1138_v44, %v1117_v33  ;;  %v1142_v47 = vadd.f32 %v1139_v45, %v1119_v12  ;;  %v1143_v51 = vadd.f32 %v1140_v16, %v1122_v37  ;;  %v2596_v33 = vld [vmem:[#allocation13 + $0x28] sm:$0xff] }
 0x6ac   :  { %1375 = vmatpush.bf16.msrb.mxu2 %v2596_v33 }
 0x6ad   :  { %1156 = vrot.lane.b32.xlu1 %v1141_v46, %s3087_s22  ;;  %1158 = vrot.lane.b32.xlu2 %v1142_v47, %s3087_s22  ;;  %v2593_v46 = vld [vmem:[#allocation13 + $0x10] sm:$0xff] }
 0x6ae   :  { %v1124_v50 = vpop.f32.mrf.mxu0 }
 0x6b5   :  { %1151 = vrot.lane.b32.xlu1 %v1122_v37, %s3100_s19  ;;  %1160 = vrot.lane.b32.xlu2 %v1143_v51, %s3087_s22  ;;  %v2595_v37 = vld [vmem:[#allocation13 + $0x20] sm:$0xff]  ;;  %s3623_s22 = sld [smem:[#allocation40_spill]] }
 0x6b6   :  { %1376 = vmatpush.bf16.msrb.mxu2 %v2595_v37 }
 0x6ba   :  { %1377 = vmatpush.bf16.msrb.mxu2 %v2594_v1 }
 0x6be   :  { %1378 = vmatpush.bf16.msrb.mxu2 %v2593_v46 }
 0x6c2   :  { %1379 = vmatpush.bf16.msrb.mxu2 %v2592_v49 }
 0x6c6   :  { %1380 = vmatpush.bf16.msrb.mxu2 %v2591_v31 }
 0x6f9   :  { %v1150_v58 = vpop.permute.xlu2 %1149 }
 0x6fa   :  { %v1154_v63 = vadd.f32 %v1150_v58, %v1145_v60  ;;  %v1249_v58 = vld [vmem:[%s3623_s22] sm:$0x1] }
 0x707   :  { %v1159_v62 = vpop.permute.xlu2 %1158 }
 0x708   :  { %v1163_v14 = vadd.f32 %v1159_v62, %v1154_v63  ;;  %v1250_v62 = vld [vmem:[%s3624_s6] sm:$0x1] }
 0x709   :  { %v1148_v59 = vpop.permute.xlu1 %1147 }
 0x70a   :  { %v1153_v8 = vadd.f32 %v1148_v59, %v1144_v61 }
 0x70f   :  { %v1161_v2 = vpop.permute.xlu2 %1160 }
 0x71f   :  { %v1157_v9 = vpop.permute.xlu1 %1156 }
 0x720   :  { %v1162_v11 = vadd.f32 %v1157_v9, %v1153_v8 }
 0x722   :  { %v1165_v13 = vpack.c.bf16 %v1163_v14, %v1162_v11 }
 0x724   :  { %1239 = vmatmul.bf16.vlgmr.msrb.gmra.mxu1 %v1165_v13 }
 0x727   :  { %v1152_v15 = vpop.permute.xlu1 %1151 }
 0x728   :  { %v1155_v0 = vadd.f32 %v1152_v15, %v1146_v19 }
 0x72a   :  { %v1164_v20 = vadd.f32 %v1161_v2, %v1155_v0 }
 0x72c   :  { %v1166_v21 = vpack.c.bf16 %v1164_v20, %v1164_v20 }
 0x734   :  { %1244 = vmatmul.bf16.gmra.mxu1 %v1166_v21 }
 0x7a1   :  { %v1240_v22 = vpop.f32.mrf.mxu1 }
 0x7a2   :  { %v1260_v25 = vmul.f32 %v1240_v22, %v1240_v22 }
 0x7a9   :  { %v1242_v6 = vpop.f32.mrf.mxu1 }
 0x7aa   :  { %v1261_v5 = vmul.f32 %v1242_v6, %v1242_v6  ;;  %v1251_v26 = vadd.f32 %v1242_v6, %v1240_v22 }
 0x7ac   :  { %v1263_v29 = vadd.f32 %v1261_v5, %v1260_v25 }
 0x7b1   :  { %v1245_v10 = vpop.f32.mrf.mxu1 }
 0x7b2   :  { %v1252_v30 = vadd.f32 %v1251_v26, %v1245_v10  ;;  %v1262_v32 = vmul.f32 %v1245_v10, %v1245_v10 }
 0x7b4   :  { %v1253_v3 = vrot.slane %v1252_v30, 4  ;;  %v1264_v12 = vadd.f32 %v1263_v29, %v1262_v32 }
 0x7b6   :  { %v1254_v36 = vadd.f32 %v1253_v3, %v1252_v30  ;;  %v1265_v35 = vrot.slane %v1264_v12, 4 }
 0x7b8   :  { %v1255_v38 = vrot.slane %v1254_v36, 2  ;;  %v1266_v39 = vadd.f32 %v1265_v35, %v1264_v12 }
 0x7b9   :  { %v1247_v40 = vpop.f32.mrf.mxu1 }
 0x7ba   :  { %v1256_v41 = vadd.f32 %v1255_v38, %v1254_v36  ;;  %v1267_v42 = vrot.slane %v1266_v39, 2 }
 0x7bc   :  { %v1257_v4 = vrot.slane %v1256_v41, 1  ;;  %v1268_v43 = vadd.f32 %v1267_v42, %v1266_v39 }
 0x7be   :  { %v1258_v44 = vadd.f32 %v1257_v4, %v1256_v41  ;;  %v1269_v45 = vrot.slane %v1268_v43, 1 }
 0x7c0   :  { %v1259_v47 = vmul.f32 0.041666668, %v1258_v44  ;;  %v1270_v48 = vadd.f32 %v1269_v45, %v1268_v43 }
 0x7c2   :  { %v1271_v50 = vmul.f32 0.041666668, %v1270_v48  ;;  %v1272_v16 = vmul.f32 %v1259_v47, %v1259_v47 }
 0x7c4   :  { %v1273_v51 = vsub.f32 %v1271_v50, %v1272_v16 }
 0x7c6   :  { %v1274_v52 = vmax.f32 %v1273_v51, 0.0 }
 0x7c8   :  { %v1275_v53 = vadd.f32 1e-05, %v1274_v52 }
 0x7ca   :  { %2709 = vrsqrt.f32 %v1275_v53  ;;  %vm1282_vm2 = vweird.f32 %v1275_v53 }
 0x7d0   :  { %v2710_v54 = vpop.eup %2709 }
 0x7d1   :  { %v1277_v55 = vmul.f32 %v2710_v54, %v1275_v53  ;;  %vm1283_vm1 = vweird.f32 %v2710_v54 }
 0x7d2   :  { %vm1284_vm3 = vmor %vm1282_vm2, %vm1283_vm1 }
 0x7d3   :  { %v1278_v56 = vmul.f32 %v2710_v54, %v1277_v55  ;;  %vm3572_vm1 = vmpackc.low %vm360_vm14, %vm360_vm14 }
 0x7d5   :  { %v1279_v57 = vmul.f32 0.5, %v1278_v56 }
 0x7d7   :  { %v1280_v17 = vsub.f32 1.5, %v1279_v57 }
 0x7d9   :  { %v1281_v59 = vmul.f32 %v2710_v54, %v1280_v17  ;;  %v1392_v17 = vld [vmem:[%s3626_s28] sm:$0x1] }
 0x7db   :  { %v1285_v60 = vsel %vm1284_vm3, %v2710_v54, %v1281_v59  ;;  %v1391_v54 = vld [vmem:[%s3625_s26] sm:$0x1] }
 0x7dc   :  { %v1286_v61 = vmul.f32 %v1285_v60, %v1249_v58 }
 0x7de   :  { %v1287_v63 = vmul.f32 %v1286_v61, %v1259_v47  ;;  %v1290_v8 = vperm.slane %v1286_v61, 0 }
 0x7e0   :  { %v1288_v9 = vsub.f32 %v1250_v62, %v1287_v63  ;;  %v1292_v14 = vmul.f32 %v1290_v8, %v1240_v22  ;;  %v1293_v11 = vmul.f32 %v1290_v8, %v1242_v6  ;;  %v1294_v21 = vmul.f32 %v1290_v8, %v1245_v10 }
 0x7e2   :  { %v1296_v13 = vperm.slane %v1288_v9, 0 }
 0x7e4   :  { %v1298_v15 = vadd.f32 %v1296_v13, %v1292_v14  ;;  %v1299_v19 = vadd.f32 %v1296_v13, %v1293_v11  ;;  %v1300_v23 = vadd.f32 %v1296_v13, %v1294_v21  ;;  %v2606_v21 = vld [vmem:[#allocation14 + $0x38] sm:$0xff] }
 0x7e5   :  { %1541 = vmatpush.bf16.msrb.mxu0 %v2606_v21 }
 0x7e6   :  { %v1301_v0 = vmax.f32 %v1298_v15, 0.0  ;;  %v1302_v2 = vmax.f32 %v1299_v19, 0.0  ;;  %v1303_v5 = vmax.f32 %v1300_v23, 0.0  ;;  %v2605_v23 = vld [vmem:[#allocation14 + $0x30] sm:$0xff] }
 0x7e8   :  { %v1307_v20 = vpack.c.bf16 %v1302_v2, %v1301_v0  ;;  %v1308_v24 = vpack.c.bf16 %v1303_v5, %v1303_v5  ;;  %v2604_v5 = vld [vmem:[#allocation14 + $0x28] sm:$0xff] }
 0x7e9   :  { %1542 = vmatpush.bf16.msrb.mxu0 %v2605_v23 }
 0x7ea   :  { %1381 = vmatmul.bf16.vlgmr.msrb.gmra.mxu2 %v1307_v20 }
 0x7ed   :  { %1543 = vmatpush.bf16.msrb.mxu0 %v2604_v5 }
 0x7fa   :  { %1386 = vmatmul.bf16.gmra.mxu2 %v1308_v24 }
 0x86d   :  { %v1382_v25 = vpop.f32.mrf.mxu2 }
 0x86e   :  { %v1402_v30 = vmul.f32 %v1382_v25, %v1382_v25 }
 0x875   :  { %v1384_v26 = vpop.f32.mrf.mxu2 }
 0x876   :  { %v1403_v29 = vmul.f32 %v1384_v26, %v1384_v26  ;;  %v1393_v32 = vadd.f32 %v1384_v26, %v1382_v25 }
 0x878   :  { %v1405_v22 = vadd.f32 %v1403_v29, %v1402_v30  ;;  %v2602_v29 = vld [vmem:[#allocation14 + $0x18] sm:$0xff]  ;;  %v2600_v30 = vld [vmem:[#allocation14 + $0x8] sm:$0xff] }
 0x87d   :  { %v1387_v33 = vpop.f32.mrf.mxu2 }
 0x87e   :  { %v1394_v6 = vadd.f32 %v1393_v32, %v1387_v33  ;;  %v1404_v3 = vmul.f32 %v1387_v33, %v1387_v33  ;;  %v2599_v32 = vld [vmem:[#allocation14] sm:$0xff] }
 0x880   :  { %v1395_v12 = vrot.slane %v1394_v6, 4  ;;  %v1406_v36 = vadd.f32 %v1405_v22, %v1404_v3  ;;  %v1469_v22 = vunpack.c.l.bf16 %v3503_v28 }
 0x882   :  { %v1396_v35 = vadd.f32 %v1395_v12, %v1394_v6  ;;  %v1407_v37 = vrot.slane %v1406_v36, 4  ;;  %v1468_v6 = vunpack.c.l.bf16 %v3501_v27 }
 0x884   :  { %v1397_v38 = vrot.slane %v1396_v35, 2  ;;  %v1408_v39 = vadd.f32 %v1407_v37, %v1406_v36 }
 0x885   :  { %v1389_v10 = vpop.f32.mrf.mxu2 }
 0x886   :  { %v1398_v40 = vadd.f32 %v1397_v38, %v1396_v35  ;;  %v1409_v41 = vrot.slane %v1408_v39, 2  ;;  %v2614_v38 = vld [vmem:[#allocation16 + $0x38] sm:$0xff] }
 0x888   :  { %v1399_v42 = vrot.slane %v1398_v40, 1  ;;  %v1410_v1 = vadd.f32 %v1409_v41, %v1408_v39  ;;  %v2613_v39 = vld [vmem:[#allocation16 + $0x30] sm:$0xff] }
 0x88a   :  { %v1400_v4 = vadd.f32 %v1399_v42, %v1398_v40  ;;  %v1411_v43 = vrot.slane %v1410_v1, 1 }
 0x88c   :  { %v1401_v44 = vmul.f32 0.041666668, %v1400_v4  ;;  %v1412_v45 = vadd.f32 %v1411_v43, %v1410_v1  ;;  %v2612_v1 = vld [vmem:[#allocation16 + $0x28] sm:$0xff] }
 0x88e   :  { %v1413_v46 = vmul.f32 0.041666668, %v1412_v45  ;;  %v1414_v47 = vmul.f32 %v1401_v44, %v1401_v44 }
 0x890   :  { %v1415_v48 = vsub.f32 %v1413_v46, %v1414_v47 }
 0x892   :  { %v1416_v49 = vmax.f32 %v1415_v48, 0.0 }
 0x894   :  { %v1417_v50 = vadd.f32 1e-05, %v1416_v49  ;;  %v2610_v49 = vld [vmem:[#allocation16 + $0x18] sm:$0xff] }
 0x896   :  { %2711 = vrsqrt.f32 %v1417_v50  ;;  %vm1424_vm5 = vweird.f32 %v1417_v50 }
 0x89c   :  { %v2712_v16 = vpop.eup %2711 }
 0x89d   :  { %v1419_v51 = vmul.f32 %v2712_v16, %v1417_v50  ;;  %vm1425_vm4 = vweird.f32 %v2712_v16 }
 0x89e   :  { %vm1426_vm15 = vmor %vm1424_vm5, %vm1425_vm4 }
 0x89f   :  { %v1420_v31 = vmul.f32 %v2712_v16, %v1419_v51 }
 0x8a1   :  { %v1421_v52 = vmul.f32 0.5, %v1420_v31 }
 0x8a3   :  { %v1422_v53 = vsub.f32 1.5, %v1421_v52  ;;  %v2609_v52 = vld [vmem:[#allocation16 + $0x10] sm:$0xff] }
 0x8a5   :  { %v1423_v55 = vmul.f32 %v2712_v16, %v1422_v53 }
 0x8a7   :  { %v1427_v56 = vsel %vm1426_vm15, %v2712_v16, %v1423_v55 }
 0x8a8   :  { %v1428_v57 = vmul.f32 %v1427_v56, %v1391_v54 }
 0x8aa   :  { %v1429_v58 = vmul.f32 %v1428_v57, %v1401_v44  ;;  %v1432_v59 = vperm.slane %v1428_v57, 0  ;;  %v2611_v44 = vld [vmem:[#allocation16 + $0x20] sm:$0xff]  ;;  %v2608_v57 = vld [vmem:[#allocation16 + $0x8] sm:$0xff] }
 0x8ac   :  { %v1430_v60 = vsub.f32 %v1392_v17, %v1429_v58  ;;  %v1436_v61 = vmul.f32 %v1432_v59, %v1387_v33  ;;  %v1434_v63 = vmul.f32 %v1432_v59, %v1382_v25  ;;  %v1435_v8 = vmul.f32 %v1432_v59, %v1384_v26  ;;  %v2603_v26 = vld [vmem:[#allocation14 + $0x20] sm:$0xff] }
 0x8ad   :  { %1544 = vmatpush.bf16.msrb.mxu0 %v2603_v26  ;;  %v2607_v59 = vld [vmem:[#allocation16] sm:$0xff] }
 0x8ae   :  { %v1438_v62 = vperm.slane %v1430_v60, 0 }
 0x8b0   :  { %v1442_v9 = vadd.f32 %v1438_v62, %v1436_v61  ;;  %v1440_v14 = vadd.f32 %v1438_v62, %v1434_v63  ;;  %v1441_v11 = vadd.f32 %v1438_v62, %v1435_v8 }
 0x8b1   :  { %1545 = vmatpush.bf16.msrb.mxu0 %v2602_v29 }
 0x8b2   :  { %v1445_v13 = vmax.f32 %v1442_v9, 0.0  ;;  %v1443_v19 = vmax.f32 %v1440_v14, 0.0  ;;  %v1444_v0 = vmax.f32 %v1441_v11, 0.0  ;;  %v1555_v14 = vld [vmem:[%s3627_s4] sm:$0x1] }
 0x8b4   :  { %v1450_v15 = vpack.c.bf16 %v1445_v13, %v1445_v13  ;;  %v1449_v20 = vpack.c.bf16 %v1444_v0, %v1443_v19  ;;  %v1556_v19 = vld [vmem:[%s3628_s27] sm:$0x1] }
 0x8b6   :  { %v1452_v2 = vsel %vm810_vm12, %v1450_v15, 0 }
 0x8b7   :  { %1460 = vmatpush.bf16.msra.mxu3 %v1452_v2 }
 0x8bb   :  { %1461 = vmatpush.bf16.msra.mxu3 %v1449_v20 }
 0x8be   :  { %2374 = vmatmul.msk.bf16.vlgmr.msra.gmra.mxu3 %vm806_vm13, %v3479_v18  ;;  %v2601_v18 = vld [vmem:[#allocation14 + $0x10] sm:$0xff] }
 0x8bf   :  { %1546 = vmatpush.bf16.msrb.mxu0 %v2601_v18  ;;  %1671 = vmatpush.bf16.msrb.mxu3 %v2614_v38 }
 0x8c3   :  { %1547 = vmatpush.bf16.msrb.mxu0 %v2600_v30  ;;  %1672 = vmatpush.bf16.msrb.mxu3 %v2613_v39 }
 0x8c7   :  { %1548 = vmatpush.bf16.msrb.mxu0 %v2599_v32  ;;  %1673 = vmatpush.bf16.msrb.mxu3 %v2612_v1 }
 0x8cb   :  { %1674 = vmatpush.bf16.msrb.mxu3 %v2611_v44 }
 0x8cf   :  { %1675 = vmatpush.bf16.msrb.mxu3 %v2610_v49 }
 0x8d3   :  { %1676 = vmatpush.bf16.msrb.mxu3 %v2609_v52  ;;  %v1685_v52 = vld [vmem:[%s3629_s25] sm:$0x1] }
 0x8d7   :  { %1677 = vmatpush.bf16.msrb.mxu3 %v2608_v57  ;;  %v350_v57 = vld [vmem:[%s3631_s10] sm:$0xff] }
 0x8db   :  { %1678 = vmatpush.bf16.msrb.mxu3 %v2607_v59  ;;  %v3102_v59 = vmov 0  }
 0x8dc   :  { %2698 = vset.pattern.permute.xlu1 %v3102_v59  ;;  %2699 = vset.pattern.permute.xlu0 %v3102_v59 }
 0x941   :  { %v3545_v24 = vpop.f32.mrf.mxu3 }
 0x942   :  { %1470 = vrot.lane.b32.xlu1 %v3545_v24, %s3100_s19 }
 0x949   :  { %v3549_v25 = vpop.f32.mrf.mxu3 }
 0x94a   :  { %1472 = vrot.lane.b32.xlu2 %v3549_v25, %s3100_s19  ;;  %1755 = vperm.xlu1 %2698, %v350_v57  }
 0x9a4   :  { %v1473_v33 = vpop.permute.xlu2 %1472 }
 0x9a5   :  { %v1475_v12 = vadd.f32 %v1473_v33, %v1469_v22 }
 0x9b4   :  { %v1471_v3 = vpop.permute.xlu1 %1470 }
 0x9b5   :  { %v1474_v36 = vadd.f32 %v1471_v3, %v1468_v6 }
 0x9b7   :  { %v1476_v35 = vpack.c.bf16 %v1475_v12, %v1474_v36 }
 0x9b9   :  { %1549 = vmatmul.bf16.vlgmr.msrb.gmra.mxu0 %v1476_v35 }
 0xa36   :  { %v1550_v37 = vpop.f32.mrf.mxu0 }
 0xa37   :  { %v1565_v40 = vmul.f32 %v1550_v37, %v1550_v37 }
 0xa3e   :  { %v1552_v10 = vpop.f32.mrf.mxu0 }
 0xa3f   :  { %v1557_v41 = vadd.f32 %v1552_v10, %v1550_v37  ;;  %v1566_v42 = vmul.f32 %v1552_v10, %v1552_v10 }
 0xa41   :  { %v1558_v4 = vrot.slane %v1557_v41, 4  ;;  %v1567_v43 = vadd.f32 %v1566_v42, %v1565_v40 }
 0xa43   :  { %v1559_v28 = vadd.f32 %v1558_v4, %v1557_v41  ;;  %v1568_v27 = vrot.slane %v1567_v43, 4 }
 0xa45   :  { %v1560_v45 = vrot.slane %v1559_v28, 2  ;;  %v1569_v46 = vadd.f32 %v1568_v27, %v1567_v43 }
 0xa47   :  { %v1561_v47 = vadd.f32 %v1560_v45, %v1559_v28  ;;  %v1570_v48 = vrot.slane %v1569_v46, 2 }
 0xa49   :  { %v1562_v50 = vrot.slane %v1561_v47, 1  ;;  %v1571_v16 = vadd.f32 %v1570_v48, %v1569_v46 }
 0xa4b   :  { %v1563_v51 = vadd.f32 %v1562_v50, %v1561_v47  ;;  %v1572_v31 = vrot.slane %v1571_v16, 1 }
 0xa4d   :  { %v1564_v53 = vmul.f32 0.1, %v1563_v51  ;;  %v1573_v54 = vadd.f32 %v1572_v31, %v1571_v16 }
 0xa4f   :  { %v1574_v55 = vmul.f32 0.1, %v1573_v54  ;;  %v1575_v56 = vmul.f32 %v1564_v53, %v1564_v53 }
 0xa51   :  { %v1576_v17 = vsub.f32 %v1574_v55, %v1575_v56  ;;  %v1686_v56 = vld [vmem:[%s3630_s2] sm:$0x1] }
 0xa53   :  { %v1577_v58 = vmax.f32 %v1576_v17, 0.0 }
 0xa55   :  { %v1578_v60 = vadd.f32 1e-05, %v1577_v58 }
 0xa57   :  { %2713 = vrsqrt.f32 %v1578_v60  ;;  %vm1585_vm13 = vweird.f32 %v1578_v60 }
 0xa5d   :  { %v2714_v61 = vpop.eup %2713 }
 0xa5e   :  { %v1580_v62 = vmul.f32 %v2714_v61, %v1578_v60  ;;  %vm1586_vm12 = vweird.f32 %v2714_v61 }
 0xa5f   :  { %vm1587_vm6 = vmor %vm1585_vm13, %vm1586_vm12 }
 0xa60   :  { %v1581_v63 = vmul.f32 %v2714_v61, %v1580_v62 }
 0xa62   :  { %v1582_v8 = vmul.f32 0.5, %v1581_v63 }
 0xa64   :  { %v1583_v9 = vsub.f32 1.5, %v1582_v8 }
 0xa66   :  { %v1584_v11 = vmul.f32 %v2714_v61, %v1583_v9 }
 0xa68   :  { %v1588_v13 = vsel %vm1587_vm6, %v2714_v61, %v1584_v11 }
 0xa69   :  { %v1589_v15 = vmul.f32 %v1588_v13, %v1555_v14 }
 0xa6b   :  { %v1590_v0 = vmul.f32 %v1589_v15, %v1564_v53  ;;  %v1593_v2 = vperm.slane %v1589_v15, 0  ;;  %v1759_v15 = vpack.c.bf16 %v3549_v25, %v3545_v24  ;;  %v2618_v24 = vld [vmem:[#allocation17 + $0x18] sm:$0xff]  ;;  %v2617_v25 = vld [vmem:[#allocation17 + $0x10] sm:$0xff] }
 0xa6d   :  { %v1591_v20 = vsub.f32 %v1556_v19, %v1590_v0  ;;  %v1595_v21 = vmul.f32 %v1593_v2, %v1550_v37  ;;  %v1596_v23 = vmul.f32 %v1593_v2, %v1552_v10  ;;  %v349_v19 = vld [vmem:[#allocation2] sm:$0xf]  ;;  %v2621_v2 = vld [vmem:[#allocation17 + $0x30] sm:$0xff] }
 0xa6e   :  { %v2622_v0 = vld [vmem:[#allocation17 + $0x38] sm:$0xff] }
 0xa6f   :  { %v1598_v5 = vperm.slane %v1591_v20, 0  ;;  %1842 = vmatpush.bf16.msra.mxu0 %v2622_v0  ;;  %v1756_v20 = vpop.permute.xlu1 %1755 }
 0xa71   :  { %v1600_v26 = vadd.f32 %v1598_v5, %v1595_v21  ;;  %v1601_v29 = vadd.f32 %v1598_v5, %v1596_v23  ;;  %v2620_v21 = vld [vmem:[#allocation17 + $0x28] sm:$0xff] }
 0xa73   :  { %v1602_v18 = vmax.f32 %v1600_v26, 0.0  ;;  %v1603_v30 = vmax.f32 %v1601_v29, 0.0  ;;  %1843 = vmatpush.bf16.msra.mxu0 %v2621_v2  ;;  %v2619_v26 = vld [vmem:[#allocation17 + $0x20] sm:$0xff]  ;;  %v2616_v29 = vld [vmem:[#allocation17 + $0x8] sm:$0xff] }
 0xa75   :  { %v2440_v32 = vpack.c.bf16 %v1603_v30, %v1602_v18 }
 0xa77   :  { %2441 = vmatmul.msk.bf16.vlgmr.msrb.gmra.mxu3 %vm3491_vm9, %v2440_v32  ;;  %1844 = vmatpush.bf16.msra.mxu0 %v2620_v21  ;;  %v2638_v21 = vld [vmem:[#allocation20 + $0x38] sm:$0xff] }
 0xa78   :  { %2092 = vmatpush.bf16.msra.mxu1 %v2638_v21 }
 0xa7b   :  { %1845 = vmatpush.bf16.msra.mxu0 %v2619_v26 }
 0xa7f   :  { %1846 = vmatpush.bf16.msra.mxu0 %v2618_v24 }
 0xa83   :  { %1847 = vmatpush.bf16.msra.mxu0 %v2617_v25 }
 0xa87   :  { %1848 = vmatpush.bf16.msra.mxu0 %v2616_v29  ;;  %v2635_v29 = vld [vmem:[#allocation20 + $0x20] sm:$0xff] }
 0xafa   :  { %v1680_v33 = vpop.f32.mrf.mxu3 }
 0xafb   :  { %v1695_v6 = vmul.f32 %v1680_v33, %v1680_v33 }
 0xb02   :  { %v1682_v22 = vpop.f32.mrf.mxu3 }
 0xb03   :  { %v1687_v3 = vadd.f32 %v1682_v22, %v1680_v33  ;;  %v1696_v12 = vmul.f32 %v1682_v22, %v1682_v22 }
 0xb05   :  { %v1688_v36 = vrot.slane %v1687_v3, 4  ;;  %v1697_v35 = vadd.f32 %v1696_v12, %v1695_v6  ;;  %v2630_v12 = vld [vmem:[#allocation19 + $0x38] sm:$0xff] }
 0xb06   :  { %1966 = vmatpush.bf16.msra.mxu3 %v2630_v12 }
 0xb07   :  { %v1689_v38 = vadd.f32 %v1688_v36, %v1687_v3  ;;  %v1698_v39 = vrot.slane %v1697_v35, 4  ;;  %v2629_v36 = vld [vmem:[#allocation19 + $0x30] sm:$0xff] }
 0xb09   :  { %v1690_v37 = vrot.slane %v1689_v38, 2  ;;  %v1699_v10 = vadd.f32 %v1698_v39, %v1697_v35  ;;  %v2628_v35 = vld [vmem:[#allocation19 + $0x28] sm:$0xff] }
 0xb0a   :  { %1967 = vmatpush.bf16.msra.mxu3 %v2629_v36 }
 0xb0b   :  { %v1691_v40 = vadd.f32 %v1690_v37, %v1689_v38  ;;  %v1700_v41 = vrot.slane %v1699_v10, 2 }
 0xb0d   :  { %v1692_v42 = vrot.slane %v1691_v40, 1  ;;  %v1701_v1 = vadd.f32 %v1700_v41, %v1699_v10  ;;  %v2627_v41 = vld [vmem:[#allocation19 + $0x20] sm:$0xff] }
 0xb0e   :  { %1968 = vmatpush.bf16.msra.mxu3 %v2628_v35 }
 0xb0f   :  { %v1693_v4 = vadd.f32 %v1692_v42, %v1691_v40  ;;  %v1702_v43 = vrot.slane %v1701_v1, 1 }
 0xb11   :  { %v1694_v28 = vmul.f32 0.1, %v1693_v4  ;;  %v1703_v27 = vadd.f32 %v1702_v43, %v1701_v1 }
 0xb12   :  { %1969 = vmatpush.bf16.msra.mxu3 %v2627_v41  ;;  %v2632_v41 = vld [vmem:[#allocation20 + $0x8] sm:$0xff] }
 0xb13   :  { %v1704_v44 = vmul.f32 0.1, %v1703_v27  ;;  %v1705_v45 = vmul.f32 %v1694_v28, %v1694_v28 }
 0xb15   :  { %v1706_v46 = vsub.f32 %v1704_v44, %v1705_v45 }
 0xb17   :  { %v1707_v47 = vmax.f32 %v1706_v46, 0.0 }
 0xb19   :  { %v1708_v48 = vadd.f32 1e-05, %v1707_v47 }
 0xb1b   :  { %2715 = vrsqrt.f32 %v1708_v48  ;;  %vm1715_vm8 = vweird.f32 %v1708_v48 }
 0xb21   :  { %v2716_v49 = vpop.eup %2715 }
 0xb22   :  { %v1710_v50 = vmul.f32 %v2716_v49, %v1708_v48  ;;  %vm1716_vm7 = vweird.f32 %v2716_v49  ;;  %v2625_v48 = vld [vmem:[#allocation19 + $0x10] sm:$0xff] }
 0xb23   :  { %vm1717_vm10 = vmor %vm1715_vm8, %vm1716_vm7 }
 0xb24   :  { %v1711_v16 = vmul.f32 %v2716_v49, %v1710_v50 }
 0xb26   :  { %v1712_v51 = vmul.f32 0.5, %v1711_v16 }
 0xb28   :  { %v1713_v31 = vsub.f32 1.5, %v1712_v51 }
 0xb2a   :  { %v1714_v53 = vmul.f32 %v2716_v49, %v1713_v31  ;;  %v2624_v31 = vld [vmem:[#allocation19 + $0x8] sm:$0xff] }
 0xb2c   :  { %v1718_v54 = vsel %vm1717_vm10, %v2716_v49, %v1714_v53 }
 0xb2d   :  { %v1719_v55 = vmul.f32 %v1718_v54, %v1685_v52  ;;  %v2623_v54 = vld [vmem:[#allocation19] sm:$0xff] }
 0xb2f   :  { %v1720_v17 = vmul.f32 %v1719_v55, %v1694_v28  ;;  %v1723_v58 = vperm.slane %v1719_v55, 0  ;;  %v2626_v28 = vld [vmem:[#allocation19 + $0x18] sm:$0xff] }
 0xb30   :  { %1970 = vmatpush.bf16.msra.mxu3 %v2626_v28 }
 0xb31   :  { %v1721_v60 = vsub.f32 %v1686_v56, %v1720_v17  ;;  %v1725_v61 = vmul.f32 %v1723_v58, %v1680_v33  ;;  %v1726_v62 = vmul.f32 %v1723_v58, %v1682_v22  ;;  %v2615_v33 = vld [vmem:[#allocation17] sm:$0xff] }
 0xb32   :  { %1849 = vmatpush.bf16.msra.mxu0 %v2615_v33 }
 0xb33   :  { %v1728_v63 = vperm.slane %v1721_v60, 0  ;;  %v1855_v60 = vld [vmem:[%s3632_s17] sm:$0x1] }
 0xb34   :  { %1971 = vmatpush.bf16.msra.mxu3 %v2625_v48 }
 0xb35   :  { %v1730_v8 = vadd.f32 %v1728_v63, %v1725_v61  ;;  %v1731_v9 = vadd.f32 %v1728_v63, %v1726_v62 }
 0xb37   :  { %v1732_v14 = vmax.f32 %v1730_v8, 0.0  ;;  %v1733_v11 = vmax.f32 %v1731_v9, 0.0  ;;  %v1856_v8 = vld [vmem:[%s3633_s1] sm:$0x1] }
 0xb38   :  { %1972 = vmatpush.bf16.msra.mxu3 %v2624_v31 }
 0xb39   :  { %v2443_v13 = vpack.c.bf16 %v1733_v11, %v1732_v14 }
 0xb3b   :  { %2444 = vmatpush.bf16.msk.msra.mxu2 %vm3491_vm9, %v2443_v13 }
 0xb3c   :  { %1973 = vmatpush.bf16.msra.mxu3 %v2623_v54 }
 0xb3e   :  { %2445 = vmatmul.msk.bf16.vlgmr.msra.gmra.mxu2 %vm414_vm0, %v349_v19 }
 0xb3f   :  { %1767 = vmatpush.bf16.msrb.mxu2 %v1759_v15 }
 0xb4e   :  { %2446 = vmatmul.msk.bf16.vlgmr.msrb.gmra.mxu2 %vm414_vm0, %v349_v19 }
 0xbc1   :  { %v1749_v23 = vpop.f32.mrf.mxu2 }
 0xbc2   :  { %v1758_v5 = vmul.f32 %v1756_v20, %v1749_v23  ;;  %v2637_v23 = vld [vmem:[#allocation20 + $0x30] sm:$0xff] }
 0xbc3   :  { %2093 = vmatpush.bf16.msra.mxu1 %v2637_v23 }
 0xbc9   :  { %v1751_v34 = vpop.f32.mrf.mxu2 }
 0xbd1   :  { %v1769_v18 = vpop.f32.mrf.mxu2 }
 0xbd2   :  { %v1773_v30 = vmul.f32 %v1769_v18, %v1756_v20 }
 0xbd4   :  { %1774 = vrot.lane.b32.xlu2 %v1773_v30, %s3100_s19 }
 0xbd9   :  { %v1771_v32 = vpop.f32.mrf.mxu2 }
 0xc2e   :  { %v1775_v22 = vpop.permute.xlu2 %1774 }
 0xc2f   :  { %v1776_v6 = vadd.f32 %v1775_v22, %v1758_v5  ;;  %v2636_v5 = vld [vmem:[#allocation20 + $0x28] sm:$0xff]  ;;  %v2634_v22 = vld [vmem:[#allocation20 + $0x18] sm:$0xff] }
 0xc30   :  { %2094 = vmatpush.bf16.msra.mxu1 %v2636_v5 }
 0xc31   :  { %v1777_v3 = vpack.c.bf16 %v1776_v6, %v1776_v6 }
 0xc33   :  { %1850 = vmatmul.bf16.vlgmr.msra.gmra.mxu0 %v1777_v3 }
 0xc34   :  { %2095 = vmatpush.bf16.msra.mxu1 %v2635_v29 }
 0xc38   :  { %2096 = vmatpush.bf16.msra.mxu1 %v2634_v22 }
 0xcb0   :  { %v1851_v38 = vpop.f32.mrf.mxu0 }
 0xcb1   :  { %v1857_v39 = vrot.slane %v1851_v38, 4  ;;  %v1864_v37 = vmul.f32 %v1851_v38, %v1851_v38 }
 0xcb3   :  { %v1858_v10 = vadd.f32 %v1857_v39, %v1851_v38  ;;  %v1865_v40 = vrot.slane %v1864_v37, 4 }
 0xcb5   :  { %v1859_v42 = vrot.slane %v1858_v10, 2  ;;  %v1866_v1 = vadd.f32 %v1865_v40, %v1864_v37 }
 0xcb7   :  { %v1860_v4 = vadd.f32 %v1859_v42, %v1858_v10  ;;  %v1867_v43 = vrot.slane %v1866_v1, 2 }
 0xcb8   :  { %v1853_v27 = vpop.f32.mrf.mxu0 }
 0xcb9   :  { %v1861_v44 = vrot.slane %v1860_v4, 1  ;;  %v1868_v45 = vadd.f32 %v1867_v43, %v1866_v1 }
 0xcbb   :  { %v1862_v46 = vadd.f32 %v1861_v44, %v1860_v4  ;;  %v1869_v47 = vrot.slane %v1868_v45, 1  ;;  %v2631_v4 = vld [vmem:[#allocation20] sm:$0xff] }
 0xcbd   :  { %v1863_v49 = vmul.f32 0.5, %v1862_v46  ;;  %v1870_v50 = vadd.f32 %v1869_v47, %v1868_v45  ;;  %v1979_v47 = vld [vmem:[%s3636_s21] sm:$0x1] }
 0xcbf   :  { %v1871_v16 = vmul.f32 0.5, %v1870_v50  ;;  %v1872_v51 = vmul.f32 %v1863_v49, %v1863_v49 }
 0xcc1   :  { %v1873_v52 = vsub.f32 %v1871_v16, %v1872_v51  ;;  %v1980_v16 = vld [vmem:[%s3282_s14] sm:$0x1]  ;;  %s3021_s14 = sshra.s32 %s2114_s8, 4  ;;  %s3022_s14 = int_to_ptr.hbm [resolvable:$true] %s3021_s14 }
 0xcc2   :  { %s3023_s20 = scalar_lea.hbm %s3022_s14, 8  ;;  %p3026_p5 = scmp.lt.s32.totalorder %s3022_s14, %s3297_s3 }
 0xcc3   :  { %v1874_v53 = vmax.f32 %v1873_v52, 0.0  ;;  %p3024_p4 = scmp.ne.s32.totalorder %s3022_s14, %s3023_s20  ;;  %p3027_p6 = scmp.lt.s32.totalorder %s3025_s16, %s3023_s20 }
 0xcc5   :  { %v1875_v55 = vadd.f32 1e-05, %v1874_v53  ;;  %p3028_p7 = por %p3027_p6, %p3026_p5 }
 0xcc7   :  { %2717 = vrsqrt.f32 %v1875_v55  ;;  %vm1882_vm9 = vweird.f32 %v1875_v55  ;;  %p3029_p8 = pnand %p3028_p7, %p3024_p4 }
 0xccd   :  { %v2718_v56 = vpop.eup %2717 }
 0xcce   :  { %v1877_v57 = vmul.f32 %v2718_v56, %v1875_v55  ;;  %vm1883_vm0 = vweird.f32 %v2718_v56 }
 0xccf   :  { %vm1884_vm11 = vmor %vm1882_vm9, %vm1883_vm0 }
 0xcd0   :  { %v1878_v17 = vmul.f32 %v2718_v56, %v1877_v57 }
 0xcd2   :  { %v1879_v58 = vmul.f32 0.5, %v1878_v17  ;;  %v2700_v17 = vld [vmem:[%s3292_s29] ss:$0 sm:$0xff] }
 0xcd4   :  { %v1880_v59 = vsub.f32 1.5, %v1879_v58 }
 0xcd6   :  { %v1881_v61 = vmul.f32 %v2718_v56, %v1880_v59 }
 0xcd8   :  { %v1885_v62 = vsel %vm1884_vm11, %v2718_v56, %v1881_v61 }
 0xcd9   :  { %v1886_v63 = vmul.f32 %v1885_v62, %v1855_v60 }
 0xcdb   :  { %v1887_v9 = vmul.f32 %v1886_v63, %v1863_v49  ;;  %v1890_v14 = vperm.slane %v1886_v63, 0 }
 0xcdd   :  { %v1888_v11 = vsub.f32 %v1856_v8, %v1887_v9  ;;  %v1892_v13 = vmul.f32 %v1890_v14, %v1851_v38  ;;  %v2633_v38 = vld [vmem:[#allocation20 + $0x10] sm:$0xff] }
 0xcde   :  { %2097 = vmatpush.bf16.msra.mxu1 %v2633_v38 }
 0xcdf   :  { %v1894_v15 = vperm.slane %v1888_v11, 0 }
 0xce1   :  { %v1896_v19 = vadd.f32 %v1894_v15, %v1892_v13 }
 0xce2   :  { %2098 = vmatpush.bf16.msra.mxu1 %v2632_v41 }
 0xce3   :  { %v1897_v0 = vmax.f32 %v1896_v19, 0.0 }
 0xce5   :  { %v2512_v20 = vpack.c.bf16 %v1897_v0, %v1897_v0 }
 0xce6   :  { %2099 = vmatpush.bf16.msra.mxu1 %v2631_v4 }
 0xce7   :  { %2513 = vmatmul.msk.bf16.vlgmr.msra.gmra.mxu3 %vm3572_vm1, %v2512_v20 }
 0xd6a   :  { %v1975_v26 = vpop.f32.mrf.mxu3 }
 0xd6b   :  { %v1981_v24 = vrot.slane %v1975_v26, 4  ;;  %v1988_v34 = vmul.f32 %v1975_v26, %v1975_v26 }
 0xd6d   :  { %v1982_v25 = vadd.f32 %v1981_v24, %v1975_v26  ;;  %v1989_v7 = vrot.slane %v1988_v34, 4 }
 0xd6f   :  { %v1983_v18 = vrot.slane %v1982_v25, 2  ;;  %v1990_v30 = vadd.f32 %v1989_v7, %v1988_v34 }
 0xd71   :  { %v1984_v32 = vadd.f32 %v1983_v18, %v1982_v25  ;;  %v1991_v33 = vrot.slane %v1990_v30, 2 }
 0xd72   :  { %v1977_v6 = vpop.f32.mrf.mxu3 }
 0xd73   :  { %v1985_v3 = vrot.slane %v1984_v32, 1  ;;  %v1992_v12 = vadd.f32 %v1991_v33, %v1990_v30 }
 0xd75   :  { %v1986_v36 = vadd.f32 %v1985_v3, %v1984_v32  ;;  %v1993_v35 = vrot.slane %v1992_v12, 1 }
 0xd77   :  { %v1987_v39 = vmul.f32 0.5, %v1986_v36  ;;  %v1994_v37 = vadd.f32 %v1993_v35, %v1992_v12 }
 0xd79   :  { %v1995_v10 = vmul.f32 0.5, %v1994_v37  ;;  %v1996_v40 = vmul.f32 %v1987_v39, %v1987_v39 }
 0xd7b   :  { %v1997_v42 = vsub.f32 %v1995_v10, %v1996_v40 }
 0xd7d   :  { %v1998_v1 = vmax.f32 %v1997_v42, 0.0 }
 0xd7f   :  { %v1999_v43 = vadd.f32 1e-05, %v1998_v1 }
 0xd81   :  { %2719 = vrsqrt.f32 %v1999_v43  ;;  %vm2006_vm3 = vweird.f32 %v1999_v43 }
 0xd87   :  { %v2720_v28 = vpop.eup %2719 }
 0xd88   :  { %v2001_v27 = vmul.f32 %v2720_v28, %v1999_v43  ;;  %vm2007_vm2 = vweird.f32 %v2720_v28 }
 0xd89   :  { %vm2008_vm4 = vmor %vm2006_vm3, %vm2007_vm2 }
 0xd8a   :  { %v2002_v44 = vmul.f32 %v2720_v28, %v2001_v27 }
 0xd8c   :  { %v2003_v45 = vmul.f32 0.5, %v2002_v44 }
 0xd8e   :  { %v2004_v46 = vsub.f32 1.5, %v2003_v45 }
 0xd90   :  { %v2005_v48 = vmul.f32 %v2720_v28, %v2004_v46 }
 0xd92   :  { %v2009_v49 = vsel %vm2008_vm4, %v2720_v28, %v2005_v48 }
 0xd93   :  { %v2010_v50 = vmul.f32 %v2009_v49, %v1979_v47 }
 0xd95   :  { %v2011_v51 = vmul.f32 %v2010_v50, %v1987_v39  ;;  %v2014_v31 = vperm.slane %v2010_v50, 0 }
 0xd97   :  { %v2012_v52 = vsub.f32 %v1980_v16, %v2011_v51  ;;  %v2016_v53 = vmul.f32 %v2014_v31, %v1975_v26 }
 0xd99   :  { %v2018_v54 = vperm.slane %v2012_v52, 0 }
 0xd9b   :  { %v2020_v55 = vadd.f32 %v2018_v54, %v2016_v53 }
 0xd9d   :  { %v2021_v56 = vmax.f32 %v2020_v55, 0.0 }
 0xd9f   :  { %v2547_v57 = vpack.c.bf16 %v2021_v56, %v2021_v56 }
 0xda1   :  { %2548 = vmatmul.msk.bf16.vlgmr.msra.gmra.mxu1 %vm3572_vm1, %v2547_v57 }
 0xe1e   :  { %v2101_v58 = vpop.f32.mrf.mxu1 }
 0xe1f   :  { %v2102_v59 = vadd.f32 %v2700_v17, %v2101_v58 }
 0xe21   :  { %2105 = vst [vmem:[#allocation22] sm:$0xff] %v2102_v59 }
 0xe22   :  { %3032 = shalt.err (!%p3029_p8)
}
 0xe23   :  { %2116 = dma.vmem_to_hbm [thread:$0]  %s2112_s0, 128, %s2114_s8, [#allocation4]  }
 0xe26   :  { %v2103_v60 = vpop.f32.mrf.mxu1 }
 0xe27   :  { %3047 = dma.done.wait [#allocation4], 128  }
 0xe28   :  { %3048 = vsyncadd [#allocation4], 4294967168 }
 0xe29   :  { %2121 = vsyncpa [#allocation3], 1 }
 0xe2a   :  { %2122 = vsyncpa [#allocation6], 1 }
 0xe2b   :  { %2123 = vsyncpa [#allocation9], 1 }
 0xe2c   :  { %2124 = vsyncpa [#allocation12], 1 }
 0xe2d   :  { %2125 = vsyncpa [#allocation15], 1 }
 0xe2e   :  { %2126 = vsyncpa [#allocation18], 1 }
 0xe2f   :  { %2127 = vsyncpa [#allocation21], 1 }
 0xe30   :  { %2128 = vsyncpa [#allocation4], 1 }

</bundles_post_ra>
